<compile_context>
chip_gen: v5e
topology: v5e:2x2
jax: 0.10.0
libtpu: 0.0.40
codegen_flags: <defaults>
</compile_context>

<pallas_src>
import functools

import jax
import jax.numpy as jnp
from jax.experimental import pallas as pl
from jax.experimental.pallas import tpu as pltpu


def _contraction_kernel(x_ref, w1_ref, w2_ref, p_ref, enc_ref, pool_ref, h_ref,
                        *, ksize, pad, pool, sub, tile_len, seq_len):
    """One (batch, length-tile) grid step; loops over `sub`-row sub-chunks.

    x_ref    : (1, Lx, Cin) bf16     zero-padded input, resident per batch element
    w1_ref   : (K*Cin, Cout) bf16    stage-1 taps, im2col layout
    w2_ref   : (K, Cout, Cout) bf16  stage-2 per-tap weights
    p_ref    : (4, Cout) f32         rows = b1, b2, bn_scale, bn_shift
    enc_ref  : (1, TL, Cout)         encoder output tile
    pool_ref : (1, TL//pool, Cout)   max-pooled output tile
    h_ref    : (sub + 2*pad, Cout) bf16  VMEM scratch for the hidden activation
    """
    t = pl.program_id(1)
    cout = enc_ref.shape[2]
    lh = sub + 2 * pad                 # hidden rows needed per sub-chunk ('same' halo)
    lw = sub + 4 * pad                 # input rows needed per sub-chunk
    n_sub = tile_len // sub
    p_sub = sub // pool

    # Epilogue params: read once per grid step, sublane-broadcast inside the loop.
    b1 = p_ref[0:1, :]
    b2 = p_ref[1:2, :]
    bn_scale = p_ref[2:3, :]
    bn_shift = p_ref[3:4, :]

    def body(s, carry):
        out_row = t * tile_len + s * sub            # first enc row of this sub-chunk
        base = pl.multiple_of(out_row, 8)           # == offset into the padded input

        # ---- Conv1d stage 1: one MXU matmul (im2col along lanes, K*Cin contraction) ----
        xw = x_ref[0, pl.ds(base, lw), :]           # (lw, Cin) bf16
        if ksize > 1:
            a1 = jnp.concatenate([xw[k:k + lh, :] for k in range(ksize)], axis=1)
        else:
            a1 = xw
        h = jnp.dot(a1, w1_ref[...], preferred_element_type=jnp.float32)
        h = jnp.maximum(h + b1, 0.0)                # bias + activation (dropout = id)

        # Zero hidden rows outside [0, seq_len) so stage 2 sees the same zero
        # 'same' padding PyTorch would at the sequence boundaries.
        row = out_row - pad + jax.lax.broadcasted_iota(jnp.int32, (lh, 1), 0)
        h = jnp.where((row >= 0) & (row < seq_len), h, 0.0)
        h_ref[...] = h.astype(jnp.bfloat16)         # stage 2 reads ref slices (no vreg spill)

        # ---- Conv1d stage 2: K accumulated MXU matmuls (full Cout-wide contraction) ----
        y = jnp.dot(h_ref[pl.ds(0, sub), :], w2_ref[0],
                    preferred_element_type=jnp.float32)
        for k in range(1, ksize):
            y = y + jnp.dot(h_ref[pl.ds(k, sub), :], w2_ref[k],
                            preferred_element_type=jnp.float32)
        y = jnp.maximum(y + b2, 0.0)                # stage-2 activation

        # ---- BatchNorm1d (inference affine) + outer ReLU ----
        y = jnp.maximum(y * bn_scale + bn_shift, 0.0)
        enc_ref[0, pl.ds(pl.multiple_of(s * sub, 8), sub), :] = y.astype(enc_ref.dtype)

        # ---- MaxPool1d(pool) along length (stride == pool, no padding) ----
        pooled = jnp.max(y.reshape(p_sub, pool, cout), axis=1)
        pool_ref[0, pl.ds(pl.multiple_of(s * p_sub, 8), p_sub), :] = (
            pooled.astype(pool_ref.dtype))
        return carry

    jax.lax.fori_loop(0, n_sub, body, None, unroll=True)


def _choose_tiles(seq_len, pool, batch, *, tile_len=None, sub_len=None,
                  sub_target=256, tile_target=2048):
    """Pick (sub-chunk rows, grid-tile rows): both multiples of 8*pool, sub | tile."""
    step = 8 * pool
    if tile_len is not None:
        sub = tile_len if sub_len is None else sub_len
        assert tile_len % step == 0 and sub % step == 0 and tile_len % sub == 0
        return sub, tile_len
    l_al = pl.cdiv(seq_len, step) * step                    # seq_len rounded up to step
    sub = sub_len if sub_len is not None else min(
        max(step, (sub_target // step) * step), l_al)
    assert sub % step == 0
    n_sub = pl.cdiv(l_al, sub)
    per_tile = max(1, min(n_sub, tile_target // sub))
    if batch == 1 and n_sub >= 2:                           # v7x megacore: >= 2 grid steps
        per_tile = min(per_tile, pl.cdiv(n_sub, 2))
    return sub, per_tile * sub


def contraction_layer(x, params, kernel_size, pool_size, *, tile_len=None, sub_len=None):
    """x: (B, L, Cin) channels-last.  Returns (pooled, enc) like the PyTorch module."""
    B, L, Cin = x.shape
    K = kernel_size
    if K % 2 != 1:
        raise ValueError("kernel_size must be odd to match PyTorch 'same' padding.")
    pad = (K - 1) // 2
    pool = pool_size
    Cout = params["w1"].shape[2]

    sub, TL = _choose_tiles(L, pool, B, tile_len=tile_len, sub_len=sub_len)
    nT = pl.cdiv(L, TL)
    tp = TL // pool
    Lp = L // pool
    Lx = nT * TL + 4 * pad                 # padded input length (2*pad halo each side + tail)

    # Rare edge: the last length tile holds < pool valid rows, so its pooled block
    # would start past the true pooled length.  Pad the pooled output just enough
    # for that block to be a normal partial block, then slice (cheap, rarely hit).
    pool_extra = 0
    if nT > 1 and (nT - 1) * tp >= Lp:
        pool_extra = (nT - 1) * tp + 1 - Lp

    # ---- wrapper glue: bf16 cast, zero halo padding, folded BN, weight layouts ----
    # NOTE: the whole padded input for one batch element stays resident in VMEM
    # (Cin is small).  For extremely long sequences, tile the input as well.
    x16 = x.astype(jnp.bfloat16)
    xext = jnp.pad(x16, ((0, 0), (2 * pad, Lx - L - 2 * pad), (0, 0)))

    w1_2d = params["w1"].reshape(K * Cin, Cout).astype(jnp.bfloat16)   # im2col taps
    w2_k = params["w2"].astype(jnp.bfloat16)                           # (K, Cout, Cout)
    eps = 1e-5
    scale = params["gamma"] * jax.lax.rsqrt(params["var"] + eps)
    shift = params["beta"] - params["mean"] * scale
    pvec = jnp.stack([params["b1"], params["b2"], scale, shift],
                     axis=0).astype(jnp.float32)                        # (4, Cout)

    kernel = functools.partial(_contraction_kernel, ksize=K, pad=pad, pool=pool,
                               sub=sub, tile_len=TL, seq_len=L)

    enc, pooled = pl.pallas_call(
        kernel,
        out_shape=(jax.ShapeDtypeStruct((B, L, Cout), x.dtype),
                   jax.ShapeDtypeStruct((B, Lp + pool_extra, Cout), x.dtype)),
        grid=(B, nT),
        in_specs=[
            pl.BlockSpec((1, Lx, Cin), lambda b, t: (b, 0, 0)),        # resident padded x
            pl.BlockSpec((K * Cin, Cout), lambda b, t: (0, 0)),        # w1 (resident)
            pl.BlockSpec((K, Cout, Cout), lambda b, t: (0, 0, 0)),     # w2 (resident)
            pl.BlockSpec((4, Cout), lambda b, t: (0, 0)),              # b1/b2/bn
        ],
        out_specs=(pl.BlockSpec((1, TL, Cout), lambda b, t: (b, t, 0)),        # enc
                   pl.BlockSpec((1, tp, Cout), lambda b, t: (b, t, 0))),       # pooled
        scratch_shapes=[pltpu.VMEM((sub + 2 * pad, Cout), jnp.bfloat16)],
        compiler_params=pltpu.CompilerParams(
            dimension_semantics=("parallel", "parallel"),
            vmem_limit_bytes=32 * 1024 * 1024),
    )(xext, w1_2d, w2_k, pvec)

    if pool_extra:
        pooled = pooled[:, :Lp, :]
    return pooled, enc


def _reference(x, params, kernel_size, pool_size):
    """Pure-JAX reference of the assumed module semantics (f32)."""
    K = kernel_size
    pad = (K - 1) // 2
    B, L, _ = x.shape
    Cout = params["w1"].shape[2]

    def conv_same(inp, w, b):                       # inp (B,L,C), w (K,C,Cout)
        xp = jnp.pad(inp, ((0, 0), (pad, pad), (0, 0)))
        y = b
        for k in range(K):
            y = y + jnp.einsum("blc,cd->bld", xp[:, k:k + L, :], w[k],
                               precision="highest")
        return y

    h = jax.nn.relu(conv_same(x, params["w1"], params["b1"]))
    y = jax.nn.relu(conv_same(h, params["w2"], params["b2"]))
    scale = params["gamma"] * jax.lax.rsqrt(params["var"] + 1e-5)
    shift = params["beta"] - params["mean"] * scale
    enc = jax.nn.relu(y * scale + shift)
    Lp = L // pool_size
    pooled = jnp.max(enc[:, :Lp * pool_size, :].reshape(B, Lp, pool_size, Cout), axis=2)
    return pooled, enc


if __name__ == "__main__":
    key = jax.random.PRNGKey(0)
    B, L, Cin, Cout = 2, 200, 8, 128          # lane-dense Cout; L not a multiple of TL
    kernel_size, pool_size = 3, 2

    ks = jax.random.split(key, 8)
    x = jax.random.normal(ks[0], (B, L, Cin), jnp.float32)

    # Deterministic synthetic parameters (shapes implied by the module __init__).
    params = dict(
        w1=0.1 * jax.random.normal(ks[1], (kernel_size, Cin, Cout), jnp.float32),
        b1=0.1 * jax.random.normal(ks[2], (Cout,), jnp.float32),
        w2=0.1 * jax.random.normal(ks[3], (kernel_size, Cout, Cout), jnp.float32),
        b2=0.1 * jax.random.normal(ks[4], (Cout,), jnp.float32),
        gamma=1.0 + 0.1 * jax.random.normal(ks[5], (Cout,), jnp.float32),
        beta=0.1 * jax.random.normal(ks[6], (Cout,), jnp.float32),
        mean=0.1 * jax.random.normal(ks[7], (Cout,), jnp.float32),
        var=jnp.ones((Cout,), jnp.float32),
    )

    ref_pooled, ref_enc = _reference(x, params, kernel_size, pool_size)

    # Explicit small tiles: 3 length tiles (last one partial) x 2 sub-chunks each
    # (exercises halo slicing, boundary masking, partial-block writeback).
    pooled, enc = contraction_layer(x, params, kernel_size, pool_size,
                                    tile_len=96, sub_len=48)
    # Auto-tiling path as well.
    pooled_d, enc_d = contraction_layer(x, params, kernel_size, pool_size)
    jax.block_until_ready((pooled, enc, pooled_d, enc_d))

    assert pooled.shape == (B, L // pool_size, Cout), pooled.shape
    assert enc.shape == (B, L, Cout), enc.shape
    assert pooled_d.shape == pooled.shape and enc_d.shape == enc.shape
    for got, want in ((enc, ref_enc), (pooled, ref_pooled),
                      (enc_d, ref_enc), (pooled_d, ref_pooled)):
        err = float(jnp.max(jnp.abs(got - want)))
        assert err < 5e-2, f"max abs error {err}"
    print("KERNEL_OK")
</pallas_src>

<mosaic_0001>
module attributes {stable_mosaic.version = 11 : i64} {
  func.func @_contraction_kernel(%arg0: i32, %arg1: i32, %arg2: memref<1x292x8xbf16, #tpu.memory_space<vmem>>, %arg3: memref<24x128xbf16, #tpu.memory_space<vmem>>, %arg4: memref<3x128x128xbf16, #tpu.memory_space<vmem>>, %arg5: memref<4x128xf32, #tpu.memory_space<vmem>>, %arg6: memref<1x96x128xf32, #tpu.memory_space<vmem>>, %arg7: memref<1x48x128xf32, #tpu.memory_space<vmem>>, %arg8: memref<50x128xbf16, #tpu.memory_space<vmem>>) attributes {dimension_semantics = [#tpu.dimension_semantics<parallel>, #tpu.dimension_semantics<parallel>], iteration_bounds = array<i64: 2, 3>, scalar_prefetch = 0 : i64, scratch_operands = 1 : i64, tpu.core_type = #tpu.core_type<tc>, window_params = [{transform_indices = @transform_0, window_bounds = array<i64: 1, 292, 8>}, {pipeline_mode = #tpu.pipeline_mode<synchronous>, transform_indices = @transform_1, window_bounds = array<i64: 24, 128>}, {pipeline_mode = #tpu.pipeline_mode<synchronous>, transform_indices = @transform_2, window_bounds = array<i64: 3, 128, 128>}, {pipeline_mode = #tpu.pipeline_mode<synchronous>, transform_indices = @transform_3, window_bounds = array<i64: 4, 128>}, {transform_indices = @transform_4, window_bounds = array<i64: 1, 96, 128>}, {transform_indices = @transform_5, window_bounds = array<i64: 1, 48, 128>}]} {
    %c0 = arith.constant 0 : index
    %c0_0 = arith.constant 0 : index
    %0 = vector.load %arg5[%c0, %c0_0] : memref<4x128xf32, #tpu.memory_space<vmem>>, vector<1x128xf32>
    %c1 = arith.constant 1 : index
    %c0_1 = arith.constant 0 : index
    %1 = vector.load %arg5[%c1, %c0_1] : memref<4x128xf32, #tpu.memory_space<vmem>>, vector<1x128xf32>
    %c2 = arith.constant 2 : index
    %c0_2 = arith.constant 0 : index
    %2 = vector.load %arg5[%c2, %c0_2] : memref<4x128xf32, #tpu.memory_space<vmem>>, vector<1x128xf32>
    %c3 = arith.constant 3 : index
    %c0_3 = arith.constant 0 : index
    %3 = vector.load %arg5[%c3, %c0_3] : memref<4x128xf32, #tpu.memory_space<vmem>>, vector<1x128xf32>
    %c0_i32 = arith.constant 0 : i32
    %c96_i32 = arith.constant 96 : i32
    %4 = arith.muli %arg1, %c96_i32 : i32
    %c48_i32 = arith.constant 48 : i32
    %5 = arith.muli %c0_i32, %c48_i32 : i32
    %6 = arith.addi %4, %5 : i32
    %7 = tpu.assume_multiple %6, 8 : i32
    %c0_4 = arith.constant 0 : index
    %8 = arith.index_cast %7 : i32 to index
    %c0_5 = arith.constant 0 : index
    %9 = vector.load %arg2[%c0_4, %8, %c0_5] : memref<1x292x8xbf16, #tpu.memory_space<vmem>>, vector<1x52x8xbf16>
    %10 = vector.shape_cast %9 : vector<1x52x8xbf16> to vector<52x8xbf16>
    %11 = vector.extract_strided_slice %10 {offsets = [0, 0], sizes = [50, 8], strides = [1, 1]} : vector<52x8xbf16> to vector<50x8xbf16>
    %12 = vector.extract_strided_slice %10 {offsets = [1, 0], sizes = [50, 8], strides = [1, 1]} : vector<52x8xbf16> to vector<50x8xbf16>
    %13 = vector.extract_strided_slice %10 {offsets = [2, 0], sizes = [50, 8], strides = [1, 1]} : vector<52x8xbf16> to vector<50x8xbf16>
    %14 = tpu.concatenate %11, %12, %13 in 1 : vector<50x8xbf16>, vector<50x8xbf16>, vector<50x8xbf16> -> vector<50x24xbf16>
    %c0_6 = arith.constant 0 : index
    %c0_7 = arith.constant 0 : index
    %15 = vector.load %arg3[%c0_6, %c0_7] : memref<24x128xbf16, #tpu.memory_space<vmem>>, vector<24x128xbf16>
    %cst = arith.constant dense<0.000000e+00> : vector<50x128xf32>
    %16 = tpu.matmul %14, %15, %cst {dimension_numbers = #tpu.dot_dimension_numbers<[1], [0], [0], [1], [0, 0, 1, 1], [], []>} : vector<50x24xbf16>, vector<24x128xbf16>, vector<50x128xf32> -> vector<50x128xf32>
    %17 = vector.broadcast %0 : vector<1x128xf32> to vector<50x128xf32>
    %18 = arith.addf %16, %17 : vector<50x128xf32>
    %cst_8 = arith.constant 0.000000e+00 : f32
    %19 = vector.broadcast %cst_8 : f32 to vector<50x128xf32>
    %20 = arith.maximumf %18, %19 : vector<50x128xf32>
    %c1_i32 = arith.constant 1 : i32
    %21 = arith.subi %6, %c1_i32 : i32
    %22 = tpu.iota {dimensions = array<i32: 0>} : vector<50x1xi32>
    %23 = vector.broadcast %21 : i32 to vector<50x1xi32>
    %24 = arith.addi %23, %22 : vector<50x1xi32>
    %c0_i32_9 = arith.constant 0 : i32
    %25 = vector.broadcast %c0_i32_9 : i32 to vector<50x1xi32>
    %26 = arith.cmpi sge, %24, %25 : vector<50x1xi32>
    %c200_i32 = arith.constant 200 : i32
    %27 = vector.broadcast %c200_i32 : i32 to vector<50x1xi32>
    %28 = arith.cmpi slt, %24, %27 : vector<50x1xi32>
    %29 = arith.andi %26, %28 : vector<50x1xi1>
    %cst_10 = arith.constant 0.000000e+00 : f32
    %30 = vector.shape_cast %29 : vector<50x1xi1> to vector<50x1xi1>
    %31 = vector.broadcast %30 : vector<50x1xi1> to vector<50x128xi1>
    %32 = vector.broadcast %cst_10 : f32 to vector<50x128xf32>
    %33 = arith.select %31, %20, %32 : vector<50x128xi1>, vector<50x128xf32>
    %34 = arith.truncf %33 : vector<50x128xf32> to vector<50x128xbf16>
    %c0_11 = arith.constant 0 : index
    %c0_12 = arith.constant 0 : index
    %35 = vector.load %arg8[%c0_11, %c0_12] : memref<50x128xbf16, #tpu.memory_space<vmem>>, vector<50x128xbf16>
    tpu.vector_store %arg8[%c0_11, %c0_12], %34 {strides = array<i32>} : memref<50x128xbf16, #tpu.memory_space<vmem>>, vector<50x128xbf16>,
    %c0_13 = arith.constant 0 : index
    %c0_14 = arith.constant 0 : index
    %36 = vector.load %arg8[%c0_13, %c0_14] : memref<50x128xbf16, #tpu.memory_space<vmem>>, vector<48x128xbf16>
    %c0_15 = arith.constant 0 : index
    %c0_16 = arith.constant 0 : index
    %c0_17 = arith.constant 0 : index
    %37 = vector.load %arg4[%c0_15, %c0_16, %c0_17] : memref<3x128x128xbf16, #tpu.memory_space<vmem>>, vector<1x128x128xbf16>
    %38 = vector.shape_cast %37 : vector<1x128x128xbf16> to vector<128x128xbf16>
    %cst_18 = arith.constant dense<0.000000e+00> : vector<48x128xf32>
    %39 = tpu.matmul %36, %38, %cst_18 {dimension_numbers = #tpu.dot_dimension_numbers<[1], [0], [0], [1], [0, 0, 1, 1], [], []>} : vector<48x128xbf16>, vector<128x128xbf16>, vector<48x128xf32> -> vector<48x128xf32>
    %c1_19 = arith.constant 1 : index
    %c0_20 = arith.constant 0 : index
    %40 = vector.load %arg8[%c1_19, %c0_20] : memref<50x128xbf16, #tpu.memory_space<vmem>>, vector<48x128xbf16>
    %c1_21 = arith.constant 1 : index
    %c0_22 = arith.constant 0 : index
    %c0_23 = arith.constant 0 : index
    %41 = vector.load %arg4[%c1_21, %c0_22, %c0_23] : memref<3x128x128xbf16, #tpu.memory_space<vmem>>, vector<1x128x128xbf16>
    %42 = vector.shape_cast %41 : vector<1x128x128xbf16> to vector<128x128xbf16>
    %cst_24 = arith.constant dense<0.000000e+00> : vector<48x128xf32>
    %43 = tpu.matmul %40, %42, %cst_24 {dimension_numbers = #tpu.dot_dimension_numbers<[1], [0], [0], [1], [0, 0, 1, 1], [], []>} : vector<48x128xbf16>, vector<128x128xbf16>, vector<48x128xf32> -> vector<48x128xf32>
    %44 = arith.addf %39, %43 : vector<48x128xf32>
    %c2_25 = arith.constant 2 : index
    %c0_26 = arith.constant 0 : index
    %45 = vector.load %arg8[%c2_25, %c0_26] : memref<50x128xbf16, #tpu.memory_space<vmem>>, vector<48x128xbf16>
    %c2_27 = arith.constant 2 : index
    %c0_28 = arith.constant 0 : index
    %c0_29 = arith.constant 0 : index
    %46 = vector.load %arg4[%c2_27, %c0_28, %c0_29] : memref<3x128x128xbf16, #tpu.memory_space<vmem>>, vector<1x128x128xbf16>
    %47 = vector.shape_cast %46 : vector<1x128x128xbf16> to vector<128x128xbf16>
    %cst_30 = arith.constant dense<0.000000e+00> : vector<48x128xf32>
    %48 = tpu.matmul %45, %47, %cst_30 {dimension_numbers = #tpu.dot_dimension_numbers<[1], [0], [0], [1], [0, 0, 1, 1], [], []>} : vector<48x128xbf16>, vector<128x128xbf16>, vector<48x128xf32> -> vector<48x128xf32>
    %49 = arith.addf %44, %48 : vector<48x128xf32>
    %50 = vector.broadcast %1 : vector<1x128xf32> to vector<48x128xf32>
    %51 = arith.addf %49, %50 : vector<48x128xf32>
    %cst_31 = arith.constant 0.000000e+00 : f32
    %52 = vector.broadcast %cst_31 : f32 to vector<48x128xf32>
    %53 = arith.maximumf %51, %52 : vector<48x128xf32>
    %54 = vector.broadcast %2 : vector<1x128xf32> to vector<48x128xf32>
    %55 = arith.mulf %53, %54 : vector<48x128xf32>
    %56 = vector.broadcast %3 : vector<1x128xf32> to vector<48x128xf32>
    %57 = arith.addf %55, %56 : vector<48x128xf32>
    %cst_32 = arith.constant 0.000000e+00 : f32
    %58 = vector.broadcast %cst_32 : f32 to vector<48x128xf32>
    %59 = arith.maximumf %57, %58 : vector<48x128xf32>
    %c48_i32_33 = arith.constant 48 : i32
    %60 = arith.muli %c0_i32, %c48_i32_33 : i32
    %61 = tpu.assume_multiple %60, 8 : i32
    %c0_34 = arith.constant 0 : index
    %62 = arith.index_cast %61 : i32 to index
    %c0_35 = arith.constant 0 : index
    %63 = vector.load %arg6[%c0_34, %62, %c0_35] : memref<1x96x128xf32, #tpu.memory_space<vmem>>, vector<1x48x128xf32>
    %64 = vector.shape_cast %63 : vector<1x48x128xf32> to vector<48x128xf32>
    %65 = vector.shape_cast %59 : vector<48x128xf32> to vector<1x48x128xf32>
    tpu.vector_store %arg6[%c0_34, %62, %c0_35], %65 {strides = array<i32>} : memref<1x96x128xf32, #tpu.memory_space<vmem>>, vector<1x48x128xf32>,
    %66 = vector.shape_cast %59 : vector<48x128xf32> to vector<24x2x128xf32>
    %cst_36 = arith.constant dense<0xFF800000> : vector<24x128xf32>
    %67 = vector.multi_reduction <maximumf>, %66, %cst_36 [1] : vector<24x2x128xf32> to vector<24x128xf32>
    %c24_i32 = arith.constant 24 : i32
    %68 = arith.muli %c0_i32, %c24_i32 : i32
    %69 = tpu.assume_multiple %68, 8 : i32
    %c0_37 = arith.constant 0 : index
    %70 = arith.index_cast %69 : i32 to index
    %c0_38 = arith.constant 0 : index
    %71 = vector.load %arg7[%c0_37, %70, %c0_38] : memref<1x48x128xf32, #tpu.memory_space<vmem>>, vector<1x24x128xf32>
    %72 = vector.shape_cast %71 : vector<1x24x128xf32> to vector<24x128xf32>
    %73 = vector.shape_cast %67 : vector<24x128xf32> to vector<1x24x128xf32>
    tpu.vector_store %arg7[%c0_37, %70, %c0_38], %73 {strides = array<i32>} : memref<1x48x128xf32, #tpu.memory_space<vmem>>, vector<1x24x128xf32>,
    %c1_i32_39 = arith.constant 1 : i32
    %c96_i32_40 = arith.constant 96 : i32
    %74 = arith.muli %arg1, %c96_i32_40 : i32
    %c48_i32_41 = arith.constant 48 : i32
    %75 = arith.muli %c1_i32_39, %c48_i32_41 : i32
    %76 = arith.addi %74, %75 : i32
    %77 = tpu.assume_multiple %76, 8 : i32
    %c0_42 = arith.constant 0 : index
    %78 = arith.index_cast %77 : i32 to index
    %c0_43 = arith.constant 0 : index
    %79 = vector.load %arg2[%c0_42, %78, %c0_43] : memref<1x292x8xbf16, #tpu.memory_space<vmem>>, vector<1x52x8xbf16>
    %80 = vector.shape_cast %79 : vector<1x52x8xbf16> to vector<52x8xbf16>
    %81 = vector.extract_strided_slice %80 {offsets = [0, 0], sizes = [50, 8], strides = [1, 1]} : vector<52x8xbf16> to vector<50x8xbf16>
    %82 = vector.extract_strided_slice %80 {offsets = [1, 0], sizes = [50, 8], strides = [1, 1]} : vector<52x8xbf16> to vector<50x8xbf16>
    %83 = vector.extract_strided_slice %80 {offsets = [2, 0], sizes = [50, 8], strides = [1, 1]} : vector<52x8xbf16> to vector<50x8xbf16>
    %84 = tpu.concatenate %81, %82, %83 in 1 : vector<50x8xbf16>, vector<50x8xbf16>, vector<50x8xbf16> -> vector<50x24xbf16>
    %c0_44 = arith.constant 0 : index
    %c0_45 = arith.constant 0 : index
    %85 = vector.load %arg3[%c0_44, %c0_45] : memref<24x128xbf16, #tpu.memory_space<vmem>>, vector<24x128xbf16>
    %cst_46 = arith.constant dense<0.000000e+00> : vector<50x128xf32>
    %86 = tpu.matmul %84, %85, %cst_46 {dimension_numbers = #tpu.dot_dimension_numbers<[1], [0], [0], [1], [0, 0, 1, 1], [], []>} : vector<50x24xbf16>, vector<24x128xbf16>, vector<50x128xf32> -> vector<50x128xf32>
    %87 = vector.broadcast %0 : vector<1x128xf32> to vector<50x128xf32>
    %88 = arith.addf %86, %87 : vector<50x128xf32>
    %cst_47 = arith.constant 0.000000e+00 : f32
    %89 = vector.broadcast %cst_47 : f32 to vector<50x128xf32>
    %90 = arith.maximumf %88, %89 : vector<50x128xf32>
    %c1_i32_48 = arith.constant 1 : i32
    %91 = arith.subi %76, %c1_i32_48 : i32
    %92 = tpu.iota {dimensions = array<i32: 0>} : vector<50x1xi32>
    %93 = vector.broadcast %91 : i32 to vector<50x1xi32>
    %94 = arith.addi %93, %92 : vector<50x1xi32>
    %c0_i32_49 = arith.constant 0 : i32
    %95 = vector.broadcast %c0_i32_49 : i32 to vector<50x1xi32>
    %96 = arith.cmpi sge, %94, %95 : vector<50x1xi32>
    %c200_i32_50 = arith.constant 200 : i32
    %97 = vector.broadcast %c200_i32_50 : i32 to vector<50x1xi32>
    %98 = arith.cmpi slt, %94, %97 : vector<50x1xi32>
    %99 = arith.andi %96, %98 : vector<50x1xi1>
    %cst_51 = arith.constant 0.000000e+00 : f32
    %100 = vector.shape_cast %99 : vector<50x1xi1> to vector<50x1xi1>
    %101 = vector.broadcast %100 : vector<50x1xi1> to vector<50x128xi1>
    %102 = vector.broadcast %cst_51 : f32 to vector<50x128xf32>
    %103 = arith.select %101, %90, %102 : vector<50x128xi1>, vector<50x128xf32>
    %104 = arith.truncf %103 : vector<50x128xf32> to vector<50x128xbf16>
    %c0_52 = arith.constant 0 : index
    %c0_53 = arith.constant 0 : index
    %105 = vector.load %arg8[%c0_52, %c0_53] : memref<50x128xbf16, #tpu.memory_space<vmem>>, vector<50x128xbf16>
    tpu.vector_store %arg8[%c0_52, %c0_53], %104 {strides = array<i32>} : memref<50x128xbf16, #tpu.memory_space<vmem>>, vector<50x128xbf16>,
    %c0_54 = arith.constant 0 : index
    %c0_55 = arith.constant 0 : index
    %106 = vector.load %arg8[%c0_54, %c0_55] : memref<50x128xbf16, #tpu.memory_space<vmem>>, vector<48x128xbf16>
    %c0_56 = arith.constant 0 : index
    %c0_57 = arith.constant 0 : index
    %c0_58 = arith.constant 0 : index
    %107 = vector.load %arg4[%c0_56, %c0_57, %c0_58] : memref<3x128x128xbf16, #tpu.memory_space<vmem>>, vector<1x128x128xbf16>
    %108 = vector.shape_cast %107 : vector<1x128x128xbf16> to vector<128x128xbf16>
    %cst_59 = arith.constant dense<0.000000e+00> : vector<48x128xf32>
    %109 = tpu.matmul %106, %108, %cst_59 {dimension_numbers = #tpu.dot_dimension_numbers<[1], [0], [0], [1], [0, 0, 1, 1], [], []>} : vector<48x128xbf16>, vector<128x128xbf16>, vector<48x128xf32> -> vector<48x128xf32>
    %c1_60 = arith.constant 1 : index
    %c0_61 = arith.constant 0 : index
    %110 = vector.load %arg8[%c1_60, %c0_61] : memref<50x128xbf16, #tpu.memory_space<vmem>>, vector<48x128xbf16>
    %c1_62 = arith.constant 1 : index
    %c0_63 = arith.constant 0 : index
    %c0_64 = arith.constant 0 : index
    %111 = vector.load %arg4[%c1_62, %c0_63, %c0_64] : memref<3x128x128xbf16, #tpu.memory_space<vmem>>, vector<1x128x128xbf16>
    %112 = vector.shape_cast %111 : vector<1x128x128xbf16> to vector<128x128xbf16>
    %cst_65 = arith.constant dense<0.000000e+00> : vector<48x128xf32>
    %113 = tpu.matmul %110, %112, %cst_65 {dimension_numbers = #tpu.dot_dimension_numbers<[1], [0], [0], [1], [0, 0, 1, 1], [], []>} : vector<48x128xbf16>, vector<128x128xbf16>, vector<48x128xf32> -> vector<48x128xf32>
    %114 = arith.addf %109, %113 : vector<48x128xf32>
    %c2_66 = arith.constant 2 : index
    %c0_67 = arith.constant 0 : index
    %115 = vector.load %arg8[%c2_66, %c0_67] : memref<50x128xbf16, #tpu.memory_space<vmem>>, vector<48x128xbf16>
    %c2_68 = arith.constant 2 : index
    %c0_69 = arith.constant 0 : index
    %c0_70 = arith.constant 0 : index
    %116 = vector.load %arg4[%c2_68, %c0_69, %c0_70] : memref<3x128x128xbf16, #tpu.memory_space<vmem>>, vector<1x128x128xbf16>
    %117 = vector.shape_cast %116 : vector<1x128x128xbf16> to vector<128x128xbf16>
    %cst_71 = arith.constant dense<0.000000e+00> : vector<48x128xf32>
    %118 = tpu.matmul %115, %117, %cst_71 {dimension_numbers = #tpu.dot_dimension_numbers<[1], [0], [0], [1], [0, 0, 1, 1], [], []>} : vector<48x128xbf16>, vector<128x128xbf16>, vector<48x128xf32> -> vector<48x128xf32>
    %119 = arith.addf %114, %118 : vector<48x128xf32>
    %120 = vector.broadcast %1 : vector<1x128xf32> to vector<48x128xf32>
    %121 = arith.addf %119, %120 : vector<48x128xf32>
    %cst_72 = arith.constant 0.000000e+00 : f32
    %122 = vector.broadcast %cst_72 : f32 to vector<48x128xf32>
    %123 = arith.maximumf %121, %122 : vector<48x128xf32>
    %124 = vector.broadcast %2 : vector<1x128xf32> to vector<48x128xf32>
    %125 = arith.mulf %123, %124 : vector<48x128xf32>
    %126 = vector.broadcast %3 : vector<1x128xf32> to vector<48x128xf32>
    %127 = arith.addf %125, %126 : vector<48x128xf32>
    %cst_73 = arith.constant 0.000000e+00 : f32
    %128 = vector.broadcast %cst_73 : f32 to vector<48x128xf32>
    %129 = arith.maximumf %127, %128 : vector<48x128xf32>
    %c48_i32_74 = arith.constant 48 : i32
    %130 = arith.muli %c1_i32_39, %c48_i32_74 : i32
    %131 = tpu.assume_multiple %130, 8 : i32
    %c0_75 = arith.constant 0 : index
    %132 = arith.index_cast %131 : i32 to index
    %c0_76 = arith.constant 0 : index
    %133 = vector.load %arg6[%c0_75, %132, %c0_76] : memref<1x96x128xf32, #tpu.memory_space<vmem>>, vector<1x48x128xf32>
    %134 = vector.shape_cast %133 : vector<1x48x128xf32> to vector<48x128xf32>
    %135 = vector.shape_cast %129 : vector<48x128xf32> to vector<1x48x128xf32>
    tpu.vector_store %arg6[%c0_75, %132, %c0_76], %135 {strides = array<i32>} : memref<1x96x128xf32, #tpu.memory_space<vmem>>, vector<1x48x128xf32>,
    %136 = vector.shape_cast %129 : vector<48x128xf32> to vector<24x2x128xf32>
    %cst_77 = arith.constant dense<0xFF800000> : vector<24x128xf32>
    %137 = vector.multi_reduction <maximumf>, %136, %cst_77 [1] : vector<24x2x128xf32> to vector<24x128xf32>
    %c24_i32_78 = arith.constant 24 : i32
    %138 = arith.muli %c1_i32_39, %c24_i32_78 : i32
    %139 = tpu.assume_multiple %138, 8 : i32
    %c0_79 = arith.constant 0 : index
    %140 = arith.index_cast %139 : i32 to index
    %c0_80 = arith.constant 0 : index
    %141 = vector.load %arg7[%c0_79, %140, %c0_80] : memref<1x48x128xf32, #tpu.memory_space<vmem>>, vector<1x24x128xf32>
    %142 = vector.shape_cast %141 : vector<1x24x128xf32> to vector<24x128xf32>
    %143 = vector.shape_cast %137 : vector<24x128xf32> to vector<1x24x128xf32>
    tpu.vector_store %arg7[%c0_79, %140, %c0_80], %143 {strides = array<i32>} : memref<1x48x128xf32, #tpu.memory_space<vmem>>, vector<1x24x128xf32>,
    %c2_i32 = arith.constant 2 : i32
    return
  }
  func.func @transform_0(%arg0: i32, %arg1: i32) -> (i32, i32, i32) {
    %c0_i32 = arith.constant 0 : i32
    %c0_i32_0 = arith.constant 0 : i32
    %c0_i32_1 = arith.constant 0 : i32
    return %arg0, %c0_i32, %c0_i32_0 : i32, i32, i32
  }
  func.func @transform_1(%arg0: i32, %arg1: i32) -> (i32, i32) {
    %c0_i32 = arith.constant 0 : i32
    %c0_i32_0 = arith.constant 0 : i32
    %c0_i32_1 = arith.constant 0 : i32
    return %c0_i32, %c0_i32_0 : i32, i32
  }
  func.func @transform_2(%arg0: i32, %arg1: i32) -> (i32, i32, i32) {
    %c0_i32 = arith.constant 0 : i32
    %c0_i32_0 = arith.constant 0 : i32
    %c0_i32_1 = arith.constant 0 : i32
    %c0_i32_2 = arith.constant 0 : i32
    return %c0_i32, %c0_i32_0, %c0_i32_1 : i32, i32, i32
  }
  func.func @transform_3(%arg0: i32, %arg1: i32) -> (i32, i32) {
    %c0_i32 = arith.constant 0 : i32
    %c0_i32_0 = arith.constant 0 : i32
    %c0_i32_1 = arith.constant 0 : i32
    return %c0_i32, %c0_i32_0 : i32, i32
  }
  func.func @transform_4(%arg0: i32, %arg1: i32) -> (i32, i32, i32) {
    %c0_i32 = arith.constant 0 : i32
    %c0_i32_0 = arith.constant 0 : i32
    return %arg0, %arg1, %c0_i32 : i32, i32, i32
  }
  func.func @transform_5(%arg0: i32, %arg1: i32) -> (i32, i32, i32) {
    %c0_i32 = arith.constant 0 : i32
    %c0_i32_0 = arith.constant 0 : i32
    return %arg0, %arg1, %c0_i32 : i32, i32, i32
  }
}

</mosaic_0001>

<bundles_post_ra>
// kernel: tpu_custom_call.1
= control target key start
LH: loop header
LB: loop body
LE: loop exit
PB: predicated region body
PF: predicated region fallthrough
CT: control target
= control target key end

     0   :  { %s3914_s0 = inlined_call_operand.vmem [shape: bf16[2,292,8], index: 0, kind: input, shape index: {}]   ;;  %s3915_s1 = inlined_call_operand.vmem [shape: bf16[24,128], index: 1, kind: input, shape index: {}]   ;;  %s3916_s2 = inlined_call_operand.vmem [shape: bf16[3,128,128], index: 2, kind: input, shape index: {}]   ;;  %s3917_s3 = inlined_call_operand.vmem [shape: f32[4,128], index: 3, kind: input, shape index: {}]   ;;  %s3918_s4 = inlined_call_operand.hbm [shape: f32[2,200,128], index: 4, kind: output, shape index: {0}]   ;;  %s3919_s5 = inlined_call_operand.vmem [shape: f32[2,100,128], index: 5, kind: output, shape index: {1}]  }
   0x1   :  { %3923 = sst [smem:[#allocation9_spill]] %s3914_s0 }
   0x2   :  { %3924 = sst [smem:[#allocation10_spill]] %s3915_s1 }
   0x3   :  { %3925 = sst [smem:[#allocation11_spill]] %s3916_s2 }
   0x4   :  { %3926 = sst [smem:[#allocation12_spill]] %s3917_s3 }
   0x5   :  { %11 = vsyncpa [#allocation4], 0 }
   0x6   :  { %13 = vsyncpa [#allocation4 + $0x1], 0  ;;  %s3163_s18 = smov 0   ;;  %s3165_s19 = smov 0  }
   0x7   :  { %s3167_s20 = smov 0   ;;  %s3169_s21 = smov 0  }
   0x8   :  { %s3171_s22 = smov 0   ;;  %s3173_s23 = smov 0  }
   0x9   :  { %s3175_s24 = smov 0   ;;  %s3177_s25 = smov 0  }
   0xa LB: > { %s2342_s26 = sadd.s32 4294967295, %s3094_s25   ;;  %s2343_s27 = sadd.s32 4294967294, %s3094_s25   ;;  %s3094_s25 = sphi %s3177_s25, %s19_s25   ;;  %s3090_s24 = sphi %s3175_s24, %s3954_s24   ;;  %s3086_s23 = sphi %s3173_s23, %s3953_s23   ;;  %s3082_s22 = sphi %s3171_s22, %s3952_s22   ;;  %s3078_s21 = sphi %s3169_s21, %s3951_s21   ;;  %s3074_s20 = sphi %s3167_s20, %s3950_s20   ;;  %s3070_s19 = sphi %s3165_s19, %s3949_s19   ;;  %s3066_s18 = sphi %s3163_s18, %s3948_s18  }
   0xb   : > { %s28_s28 = sadd.s32 1, %s3086_s23  ;;  %s31_s29 = sadd.s32 1, %s3090_s24 }
   0xc   : > { %p29_p0 = scmp.ge.s32.totalorder %s28_s28, 3  ;;  %p139_p1 = scmp.ne.s32.totalorder %s3074_s20, %s3070_s19 }
   0xd   : > { %p140_p2 = scmp.eq.s32.totalorder %s2342_s26, 5  ;;  %p145_p5 = scmp.ne.s32.totalorder %s3070_s19, %s3066_s18 }
   0xe   : > { %s3956_s28 = smov (%p29_p0, %s28_s28), 0  ;;  %s3958_s29 = smov (!%p29_p0, %s31_s29), %s3090_s24 }
   0xf   : > { %3927 = sst [smem:[#allocation7_spill]] %s3956_s28  ;;  %s125_s30 = ssub.s32 %s3086_s23, %s3956_s28 }
  0x10   : > { %p3214_p3 = por %p140_p2, %p139_p1  ;;  %p33_p4 = scmp.ge.s32.totalorder %s3958_s29, 2 }
  0x11   : > { %p146_p6 = scmp.eq.s32.totalorder %s2343_s27, 5  ;;  %p2346_p7 = scmp.ge.s32.totalorder %s3094_s25, 1 }
  0x12   : > { %s3960_s29 = smov (%p33_p4, %s3958_s29), 0  ;;  %p209_p9 = scmp.lt.s32.totalorder %s3094_s25, 7 }
  0x13   : > { %3929 = sst [smem:[#allocation8_spill]] %s3960_s29  ;;  %p3223_p8 = por %p146_p6, %p145_p5 }
  0x14   : > { %s124_s8 = ssub.s32 %s3090_s24, %s3960_s29  ;;  %s129_s9 = sadd.s32 1, %s3074_s20 }
  0x15   : > { %s126_s10 = sor.u32 %s125_s30, %s124_s8  ;;  %p210_p10 = pnand %p2346_p7, %p209_p9 }
  0x16   : > { %p127_p11 = scmp.eq.s32.totalorder %s126_s10, 0  ;;  %p241_p12 = scmp.lt.s32.totalorder (!%p210_p10), %s3082_s22, 1 }
  0x17   : > { %213 = sbr.rel (%p210_p10) target bundleno = 708 (0x2c4), region = 36  ;;  %s3931_s0 = sld [smem:[#allocation9_spill]] (!%p210_p10) }
  0x18   : > { %s3232_s11 = scalar_select %p127_p11, %s3074_s20, %s129_s9  }
  0x19   : > { %s3236_s12 = smul.u32 (!%p210_p10), 96, %s3078_s21  ;;  %s3932_s1 = sld [smem:[#allocation10_spill]] (!%p210_p10) }
  0x1a   : > { %s3933_s2 = sld [smem:[#allocation11_spill]] (!%p210_p10) }
  0x1b   : > { %s262_s14 = sshra.s32 (!%p210_p10), %s3236_s12, 3  ;;  %s1152_s8 = sadd.s32 (!%p210_p10), 48, %s3236_s12 }
  0x1c   : > { %s242_s13 = scalar_select %p241_p12, %s3082_s22, 1  ;;  %vm291_vm0 = vsmask.f32 7424  ;;  %vm331_vm1 = vcmask 1046528   ;;  %vm387_vm2 = vcmask 1043456   ;;  %vm347_vm3 = vcmask 64512  }
  0x1d   : > { %s2348_s16 = sshll.u32 %s262_s14, 2  ;;  %s1153_s9 = sshra.s32 %s1152_s8, 3  ;;  %vm356_vm4 = vcmask 130048   ;;  %vm378_vm5 = vcmask 195584  }
  0x1e   : > { %s2799_s15 = smul.u32 148, %s242_s13  ;;  %s2506_s10 = sshll.u32 %s1153_s9, 2 }
  0x1f   : > { %s3128_s13 = smov 8   ;;  %v367_v62 = vld [vmem:[%s3932_s1 + $0x8] sm:$0xf]  ;;  %s3934_s3 = sld [smem:[#allocation12_spill]] }
  0x20   : > { %s3243_s27 = scalar_lea.vmem %s3931_s0, %s2799_s15  ;;  %s3129_s15 = smov 16   ;;  %v374_v63 = vunpack.c.l.b16 %v367_v62 }
  0x21   : > { %s265_s30 = scalar_lea.vmem %s3243_s27, %s2348_s16  ;;  %s1156_s14 = scalar_lea.vmem %s3243_s27, %s2506_s10 }
  0x22   : > { %v3246_v0 = vld [vmem:[%s265_s30] sm:$0xff]  ;;  %v3248_v1 = vld [vmem:[%s265_s30 + $0x8] sm:$0xff]  ;;  %v3250_v2 = vld [vmem:[%s265_s30 + $0x10] sm:$0xff]  ;;  %s1310_s8 = sadd.s32 47, %s3236_s12 }
  0x23   : > { %v272_v3 = vld [vmem:[%s265_s30 + $0x18] sm:$0x3]  ;;  %v293_v4 = vshrl.u32 %v3246_v0, 16  ;;  %v295_v5 = vshll.u32 %v3246_v0, 16  ;;  %v300_v6 = vshll.u32 %v3248_v1, 16  ;;  %v304_v7 = vshrl.u32 %v3248_v1, 16 }
  0x24   : > { %v308_v8 = vshll.u32 %v3250_v2, 16  ;;  %v286_v11 = vunpack.c.l.b16 %v272_v3  ;;  %v312_v12 = vshrl.u32 %v3250_v2, 16  ;;  %v332_v21 = vrot.slane %v3246_v0, 1  ;;  %v3271_v26 = vld [vmem:[%s1156_s14] sm:$0xff]  ;;  %v3278_v31 = vld [vmem:[%s1156_s14 + $0x8] sm:$0xff]  ;;  %v3284_v34 = vld [vmem:[%s1156_s14 + $0x10] sm:$0xff] }
  0x25   : > { %v297_v9 = vrot.slane %v295_v5, 1  ;;  %v302_v10 = vrot.slane %v300_v6, 1  ;;  %v333_v22 = vrot.slane %v3248_v1, 1  ;;  %v335_v23 = vrot.slane %v3250_v2, 1  ;;  %v1163_v38 = vld [vmem:[%s1156_s14 + $0x18] sm:$0x3] }
  0x26   : > { %v310_v13 = vrot.slane %v308_v8, 1  ;;  %v3259_v16 = vpack.c.b16 %v286_v11, %v286_v11  ;;  %v1185_v30 = vshll.u32 %v3271_v26, 16  ;;  %v1190_v35 = vshll.u32 %v3278_v31, 16  ;;  %v2692_v5 = vld [vmem:[%s3932_s1] sm:$0xff]  ;;  %v1254_v6 = vld [vmem:[%s3932_s1 + $0x8] sm:$0xf] }
  0x27   : > { %v298_v14 = vor.u32 %v297_v9, %v293_v4  ;;  %v306_v15 = vor.u32 %v304_v7, %v302_v10  ;;  %v334_v27 = vsel %vm331_vm1, %v332_v21, %v333_v22  ;;  %v336_v28 = vsel %vm331_vm1, %v333_v22, %v335_v23  ;;  %s2369_s14 = sadd.s32 4294967295, %s3236_s12 }
  0x28   : > { %v314_v19 = vor.u32 %v312_v12, %v310_v13  ;;  %v316_v20 = vshll.u32 %v3259_v16, 16  ;;  %v337_v29 = vrot.slane %v3259_v16, 1  ;;  %v320_v32 = vshrl.u32 %v3259_v16, 16 }
  0x29   : > { %v303_v17 = vsel %vm291_vm0, %v298_v14, %v302_v10  ;;  %v311_v18 = vsel %vm291_vm0, %v306_v15, %v310_v13  ;;  %v1183_v36 = vshrl.u32 %v3271_v26, 16  ;;  %v1187_v37 = vrot.slane %v1185_v30, 1 }
  0x2a   : > { %323 = vrot.lane.b32.xlu0 %v303_v17, %s3128_s13  ;;  %325 = vrot.lane.b32.xlu1 %v311_v18, %s3128_s13  ;;  %v318_v24 = vrot.slane %v316_v20, 1  ;;  %v338_v33 = vsel %vm331_vm1, %v335_v23, %v337_v29  ;;  %v1194_v40 = vshrl.u32 %v3278_v31, 16  ;;  %v1192_v41 = vrot.slane %v1190_v35, 1  ;;  %v2722_v17 = vld [vmem:[%s3932_s1] sm:$0xff] }
  0x2b   : > { %v1198_v42 = vshll.u32 %v3284_v34, 16  ;;  %v1188_v43 = vor.u32 %v1187_v37, %v1183_v36  ;;  %v1177_v44 = vunpack.c.l.b16 %v1163_v38  ;;  %v1221_v45 = vrot.slane %v3271_v26, 1  ;;  %v2700_v38 = vld [vmem:[%s3933_s2 + $0x28] sm:$0xff] }
  0x2c   : > { %v319_v25 = vsel %vm291_vm0, %v314_v19, %v318_v24  ;;  %v322_v39 = vor.u32 %v320_v32, %v318_v24  ;;  %v1222_v46 = vrot.slane %v3278_v31, 1  ;;  %v1196_v47 = vor.u32 %v1194_v40, %v1192_v41 }
  0x2d   : > { %327 = vrot.lane.b32.xlu2 %v319_v25, %s3128_s13  ;;  %v1200_v48 = vrot.slane %v1198_v42, 1  ;;  %v1193_v49 = vsel %vm291_vm0, %v1188_v43, %v1192_v41  ;;  %v3296_v50 = vpack.c.b16 %v1177_v44, %v1177_v44  ;;  %v1202_v53 = vshrl.u32 %v3284_v34, 16  ;;  %v2698_v42 = vld [vmem:[%s3933_s2 + $0x18] sm:$0xff]  ;;  %v2697_v44 = vld [vmem:[%s3933_s2 + $0x10] sm:$0xff] }
  0x2e   : > { %v1223_v51 = vsel %vm331_vm1, %v1221_v45, %v1222_v46  ;;  %v1224_v55 = vrot.slane %v3284_v34, 1  ;;  %v376_v3 = vpack.c.b16 %v374_v63, %v374_v63  ;;  %v1260_v7 = vunpack.c.l.b16 %v1254_v6  ;;  %v2705_v6 = vld [vmem:[%s3933_s2 + $0x50] sm:$0xff] }
  0x2f   : > { %v1201_v52 = vsel %vm291_vm0, %v1196_v47, %v1200_v48  ;;  %v1206_v54 = vshll.u32 %v3296_v50, 16  ;;  %v1204_v56 = vor.u32 %v1202_v53, %v1200_v48  ;;  %v1226_v58 = vrot.slane %v3296_v50, 1  ;;  %v2695_v47 = vld [vmem:[%s3933_s2] sm:$0xff] }
  0x30   : > { %v1225_v59 = vsel %vm331_vm1, %v1222_v46, %v1224_v55  ;;  %v389_v4 = vsel %vm387_vm2, %v376_v3, 0  ;;  %v1262_v8 = vpack.c.b16 %v1260_v7, %v1260_v7  ;;  %v1210_v10 = vshrl.u32 %v3296_v50, 16  ;;  %v2718_v46 = vld [vmem:[%s3933_s2 + $0xb8] sm:$0xff]  ;;  %v2713_v3 = vld [vmem:[%s3933_s2 + $0x90] sm:$0xff] }
  0x31   : > { %v1208_v57 = vrot.slane %v1206_v54, 1  ;;  %v1227_v61 = vsel %vm331_vm1, %v1224_v55, %v1226_v58  ;;  %397 = vmatpush.bf16.msra.mxu0 %v389_v4  ;;  %814 = vmatpush.bf16.msra.mxu3 %v2718_v46  ;;  %v2716_v54 = vld [vmem:[%s3933_s2 + $0xa8] sm:$0xff]  ;;  %v3417_v62 = vstv %s2369_s14  ;;  %s2029_s14 = smul.u32 (%p3214_p3), 12, %s3078_s21 }
  0x32   : > { %339 = vrot.lane.b32.xlu0 %v334_v27, %s3129_s15  ;;  %341 = vrot.lane.b32.xlu1 %v336_v28, %s3129_s15  ;;  %v1273_v9 = vsel %vm387_vm2, %v1262_v8, 0  ;;  %v2708_v55 = vld [vmem:[%s3933_s2 + $0x68] sm:$0xff] }
  0x33   : > { %v1209_v60 = vsel %vm291_vm0, %v1204_v56, %v1208_v57  ;;  %v1212_v11 = vor.u32 %v1210_v10, %v1208_v57  ;;  %v2715_v56 = vld [vmem:[%s3933_s2 + $0xa0] sm:$0xff]  ;;  %v427_v57 = vlaneseq }
  0x35   : > { %343 = vrot.lane.b32.xlu2 %v338_v33, %s3129_s15  ;;  %398 = vmatpush.bf16.msra.mxu0 %v2692_v5  ;;  %v3428_v5 = vld [vmem:[%s3934_s3] ss:$0 sm:$0xff] }
  0x39   : > { %1281 = vmatpush.bf16.msrb.mxu0 %v1273_v9  ;;  %v2712_v9 = vld [vmem:[%s3933_s2 + $0x88] sm:$0xff] }
  0x3a   : > { %329 = vrot.lane.b32.xlu0 %v322_v39, %s3128_s13  ;;  %345 = vrot.lane.b32.xlu1 %v337_v29, %s3129_s15  ;;  %v2699_v39 = vld [vmem:[%s3933_s2 + $0x20] sm:$0xff] }
  0x3d   : > { %1213 = vrot.lane.b32.xlu2 %v1193_v49, %s3128_s13  ;;  %1282 = vmatpush.bf16.msrb.mxu0 %v2722_v17 }
  0x42   : > { %1228 = vrot.lane.b32.xlu0 %v1223_v51, %s3129_s15  ;;  %1215 = vrot.lane.b32.xlu1 %v1201_v52, %s3128_s13  ;;  %v2710_v51 = vld [vmem:[%s3933_s2 + $0x78] sm:$0xff]  ;;  %v2717_v52 = vld [vmem:[%s3933_s2 + $0xb0] sm:$0xff] }
  0x43   : > { %636 = vmatpush.bf16.msra.mxu1 %v2710_v51  ;;  %815 = vmatpush.bf16.msra.mxu3 %v2717_v52  ;;  %v2740_v51 = vld [vmem:[%s3933_s2 + $0x78] sm:$0xff]  ;;  %v2747_v52 = vld [vmem:[%s3933_s2 + $0xb0] sm:$0xff] }
  0x45   : > { %1230 = vrot.lane.b32.xlu2 %v1225_v59, %s3129_s15  ;;  %v2714_v59 = vld [vmem:[%s3933_s2 + $0x98] sm:$0xff] }
  0x47   : > { %816 = vmatpush.bf16.msra.mxu3 %v2716_v54 }
  0x4a   : > { %1217 = vrot.lane.b32.xlu0 %v1209_v60, %s3128_s13  ;;  %1232 = vrot.lane.b32.xlu1 %v1227_v61, %s3129_s15  ;;  %v3412_v60 = vshrl.u32 %v427_v57, 7  ;;  %v2706_v61 = vld [vmem:[%s3933_s2 + $0x58] sm:$0xff] }
  0x4b   : > { %817 = vmatpush.bf16.msra.mxu3 %v2715_v56  ;;  %v2726_v56 = vld [vmem:[%s3933_s2 + $0x8] sm:$0xff] }
  0x4c   : > { %v3420_v63 = vadd.s32 8, %v3412_v60  ;;  %v436_v7 = vadd.s32 %v3417_v62, %v3412_v60 }
  0x4d   : > { %1219 = vrot.lane.b32.xlu2 %v1212_v11, %s3128_s13  ;;  %v2704_v11 = vld [vmem:[%s3933_s2 + $0x48] sm:$0xff]  ;;  %s3592_s13 = sand.u32 1, %s3070_s19  }
  0x4e   : > { %v437_v8 = vadd.s32 %v3417_v62, %v3420_v63  ;;  %vm443_vm6 = vcmp.ge.s32.totalorder %v436_v7, 0  ;;  %vm450_vm7 = vcmp.lt.s32.totalorder %v436_v7, 200  ;;  %s2797_s27 = smul.u32 96, %s3592_s13  ;;  %s3920_s10 = scalar_lea.sflag [#allocation4], %s3592_s13 }
  0x4f   : > { %818 = vmatpush.bf16.msra.mxu3 %v2714_v59  ;;  %vm3447_vm10 = vmand %vm443_vm6, %vm450_vm7 }
  0x50   : > { %vm444_vm8 = vcmp.ge.s32.totalorder %v437_v8, 0  ;;  %vm451_vm9 = vcmp.lt.s32.totalorder %v437_v8, 200  ;;  %s3644_s30 = scalar_lea.vmem [#allocation3], %s2797_s27 }
  0x51   : > { %vm458_vm11 = vmand %vm444_vm8, %vm451_vm9 }
  0x52   : > { %1234 = vrot.lane.b32.xlu0 %v1226_v58, %s3129_s15  ;;  %v2707_v58 = vld [vmem:[%s3933_s2 + $0x60] sm:$0xff]  ;;  %vm2951_vm12 = vmpackc.low %vm458_vm11, %vm3447_vm10  ;;  %s2030_s15 = ssub.s32 (%p3214_p3), 25, %s2029_s14 }
  0x53   : > { %819 = vmatpush.bf16.msra.mxu3 %v2713_v3  ;;  %p2031_p13 = scmp.lt.s32.totalorder (%p3214_p3), %s2030_s15, 12 }
  0x57   : > { %820 = vmatpush.bf16.msra.mxu3 %v2712_v9 }
  0x9c   : > { %v324_v12 = vpop.permute.xlu0 %323  ;;  %v326_v18 = vpop.permute.xlu1 %325 }
  0x9d   : > { %v349_v13 = vsel %vm347_vm3, %v3246_v0, %v324_v12  ;;  %v351_v19 = vsel %vm347_vm3, %v3248_v1, %v326_v18  ;;  %v328_v0 = vpop.permute.xlu2 %327  ;;  %v2711_v12 = vld [vmem:[%s3933_s2 + $0x80] sm:$0xff] }
  0x9e   : > { %v353_v22 = vsel %vm347_vm3, %v3250_v2, %v328_v0  ;;  %821 = vmatpush.bf16.msra.mxu3 %v2711_v12  ;;  %v2703_v18 = vld [vmem:[%s3933_s2 + $0x40] sm:$0xff] }
  0x9f   : > { %v2725_v12 = vld [vmem:[%s3933_s2] sm:$0xff] }
  0xa4   : > { %v340_v14 = vpop.permute.xlu0 %339  ;;  %v342_v20 = vpop.permute.xlu1 %341 }
  0xa5   : > { %v358_v15 = vsel %vm356_vm4, %v349_v13, %v340_v14  ;;  %v360_v21 = vsel %vm356_vm4, %v351_v19, %v342_v20  ;;  %v344_v23 = vpop.permute.xlu2 %343 }
  0xa6   : > { %2365 = vmatmul.msk.bf16.vlgmr.msra.gmra.mxu0 %vm378_vm5, %v358_v15  ;;  %v362_v24 = vsel %vm356_vm4, %v353_v22, %v344_v23  ;;  %v3460_v22 = vadd.s32 16, %v3412_v60  ;;  %v3463_v23 = vadd.s32 24, %v3412_v60 }
  0xac   : > { %v330_v25 = vpop.permute.xlu0 %329  ;;  %v346_v28 = vpop.permute.xlu1 %345 }
  0xad   : > { %v355_v27 = vsel %vm347_vm3, %v3259_v16, %v330_v25  ;;  %v1214_v29 = vpop.permute.xlu2 %1213  ;;  %v2702_v16 = vld [vmem:[%s3933_s2 + $0x38] sm:$0xff] }
  0xae   : > { %v364_v1 = vsel %vm356_vm4, %v355_v27, %v346_v28  ;;  %v1237_v30 = vsel %vm347_vm3, %v3271_v26, %v1214_v29  ;;  %711 = vmatpush.bf16.msra.mxu2 %v2702_v16  ;;  %v2701_v26 = vld [vmem:[%s3933_s2 + $0x30] sm:$0xff]  ;;  %v438_v28 = vadd.s32 %v3417_v62, %v3460_v22  ;;  %v2729_v16 = vld [vmem:[%s3933_s2 + $0x20] sm:$0xff] }
  0xaf   : > { %v2731_v29 = vld [vmem:[%s3933_s2 + $0x30] sm:$0xff] }
  0xb0   : > { %vm445_vm13 = vcmp.ge.s32.totalorder %v438_v28, 0  ;;  %vm452_vm14 = vcmp.lt.s32.totalorder %v438_v28, 200  ;;  %v2744_v28 = vld [vmem:[%s3933_s2 + $0x98] sm:$0xff] }
  0xb2   : > { %712 = vmatpush.bf16.msra.mxu2 %v2701_v26 }
  0xb4   : > { %v1229_v32 = vpop.permute.xlu0 %1228  ;;  %v1216_v33 = vpop.permute.xlu1 %1215 }
  0xb5   : > { %v1245_v2 = vsel %vm356_vm4, %v1237_v30, %v1229_v32  ;;  %v1239_v35 = vsel %vm347_vm3, %v3278_v31, %v1216_v33  ;;  %v1231_v36 = vpop.permute.xlu2 %1230  ;;  %v2730_v32 = vld [vmem:[%s3933_s2 + $0x28] sm:$0xff] }
  0xb6   : > { %2366 = vmatmul.msk.bf16.gmra.mxu0 %vm378_vm5, %v360_v21  ;;  %v1247_v37 = vsel %vm356_vm4, %v1239_v35, %v1231_v36  ;;  %713 = vmatpush.bf16.msra.mxu2 %v2700_v38 }
  0xba   : > { %714 = vmatpush.bf16.msra.mxu2 %v2699_v39  ;;  %v3490_v39 = vadd.s32 32, %v3412_v60 }
  0xbc   : > { %v1218_v31 = vpop.permute.xlu0 %1217  ;;  %v1233_v41 = vpop.permute.xlu1 %1232 }
  0xbd   : > { %v1241_v40 = vsel %vm347_vm3, %v3284_v34, %v1218_v31  ;;  %v2696_v34 = vld [vmem:[%s3933_s2 + $0x8] sm:$0xff]  ;;  %v1220_v45 = vpop.permute.xlu2 %1219 }
  0xbe   : > { %v1249_v43 = vsel %vm356_vm4, %v1241_v40, %v1233_v41  ;;  %715 = vmatpush.bf16.msra.mxu2 %v2698_v42  ;;  %v1243_v48 = vsel %vm347_vm3, %v3296_v50, %v1220_v45  ;;  %v2709_v50 = vld [vmem:[%s3933_s2 + $0x70] sm:$0xff]  ;;  %vm459_vm3 = vmand %vm445_vm13, %vm452_vm14  ;;  %v3493_v40 = vadd.s32 40, %v3412_v60  ;;  %v2728_v41 = vld [vmem:[%s3933_s2 + $0x18] sm:$0xff] }
  0xbf   : > { %637 = vmatpush.bf16.msra.mxu1 %v2709_v50 }
  0xc0   : > { %v441_v45 = vadd.s32 %v3417_v62, %v3493_v40 }
  0xc2   : > { %716 = vmatpush.bf16.msra.mxu2 %v2697_v44  ;;  %vm448_vm7 = vcmp.ge.s32.totalorder %v441_v45, 0  ;;  %vm455_vm8 = vcmp.lt.s32.totalorder %v441_v45, 200 }
  0xc3   : > { %638 = vmatpush.bf16.msra.mxu1 %v2708_v55  ;;  %v2739_v55 = vld [vmem:[%s3933_s2 + $0x70] sm:$0xff] }
  0xc4   : > { %v1235_v49 = vpop.permute.xlu0 %1234 }
  0xc5   : > { %v1251_v53 = vsel %vm356_vm4, %v1243_v48, %v1235_v49 }
  0xc6   : > { %2367 = vmatmul.msk.bf16.gmra.mxu0 %vm378_vm5, %v362_v24  ;;  %717 = vmatpush.bf16.msra.mxu2 %v2696_v34  ;;  %v2732_v24 = vld [vmem:[%s3933_s2 + $0x38] sm:$0xff]  ;;  %v440_v34 = vadd.s32 %v3417_v62, %v3490_v39 }
  0xc7   : > { %639 = vmatpush.bf16.msra.mxu1 %v2707_v58 }
  0xc8   : > { %vm454_vm6 = vcmp.lt.s32.totalorder %v440_v34, 200 }
  0xca   : > { %718 = vmatpush.bf16.msra.mxu2 %v2695_v47  ;;  %v2727_v47 = vld [vmem:[%s3933_s2 + $0x10] sm:$0xff] }
  0xcb   : > { %640 = vmatpush.bf16.msra.mxu1 %v2706_v61 }
  0xce   : > { %1586 = vmatpush.bf16.msrb.mxu2 %v2732_v24 }
  0xcf   : > { %641 = vmatpush.bf16.msra.mxu1 %v2705_v6 }
  0xd2   : > { %1587 = vmatpush.bf16.msrb.mxu2 %v2731_v29 }
  0xd3   : > { %642 = vmatpush.bf16.msra.mxu1 %v2704_v11 }
  0xd6   : > { %2368 = vmatmul.msk.bf16.gmra.mxu0 %vm378_vm5, %v364_v1  ;;  %v439_v1 = vadd.s32 %v3417_v62, %v3463_v23  ;;  %1588 = vmatpush.bf16.msrb.mxu2 %v2730_v32 }
  0xd7   : > { %643 = vmatpush.bf16.msra.mxu1 %v2703_v18  ;;  %v2746_v18 = vld [vmem:[%s3933_s2 + $0xa8] sm:$0xff] }
  0xd8   : > { %vm446_vm15 = vcmp.ge.s32.totalorder %v439_v1, 0  ;;  %vm453_vm2 = vcmp.lt.s32.totalorder %v439_v1, 200 }
  0xd9   : > { %vm460_vm4 = vmand %vm446_vm15, %vm453_vm2 }
  0xda   : > { %1589 = vmatpush.bf16.msrb.mxu2 %v2729_v16 }
  0xdb   : > { %1511 = vmatpush.bf16.msrb.mxu1 %v2740_v51 }
  0xde   : > { %1590 = vmatpush.bf16.msrb.mxu2 %v2728_v41 }
  0xdf   : > { %1512 = vmatpush.bf16.msrb.mxu1 %v2739_v55 }
  0xe2   : > { %1591 = vmatpush.bf16.msrb.mxu2 %v2727_v47 }
  0xe6   : > { %2523 = vmatmul.msk.bf16.vlgmr.msrb.gmra.mxu0 %vm378_vm5, %v1245_v2  ;;  %1592 = vmatpush.bf16.msrb.mxu2 %v2726_v56 }
  0xea   : > { %1593 = vmatpush.bf16.msrb.mxu2 %v2725_v12 }
  0xf6   : > { %2524 = vmatmul.msk.bf16.gmra.mxu0 %vm378_vm5, %v1247_v37  ;;  %v2748_v37 = vld [vmem:[%s3933_s2 + $0xb8] sm:$0xff] }
  0xf7   : > { %1688 = vmatpush.bf16.msrb.mxu3 %v2748_v37  ;;  %v2736_v37 = vld [vmem:[%s3933_s2 + $0x58] sm:$0xff] }
  0xfb   : > { %1689 = vmatpush.bf16.msrb.mxu3 %v2747_v52 }
  0xff   : > { %1690 = vmatpush.bf16.msrb.mxu3 %v2746_v18 }
 0x106   : > { %2525 = vmatmul.msk.bf16.gmra.mxu0 %vm378_vm5, %v1249_v43 }
 0x116   : > { %2526 = vmatmul.msk.bf16.gmra.mxu0 %vm378_vm5, %v1251_v53  ;;  %vm447_vm5 = vcmp.ge.s32.totalorder %v440_v34, 0  ;;  %v3514_v53 = vadd.s32 48, %v3412_v60 }
 0x117   : > { %vm461_vm9 = vmand %vm447_vm5, %vm454_vm6 }
 0x118   : > { %v442_v7 = vadd.s32 %v3417_v62, %v3514_v53 }
 0x123   : > { %v400_v4 = vpop.f32.mrf.mxu0 }
 0x124   : > { %v401_v10 = vadd.f32 %v3428_v5, %v400_v4 }
 0x126   : > { %v419_v14 = vmax.f32 %v401_v10, 0.0 }
 0x128   : > { %v478_v20 = vsel %vm3447_vm10, %v419_v14, 0.0  ;;  %vm462_vm10 = vmand %vm448_vm7, %vm455_vm8 }
 0x12b   : > { %v402_v13 = vpop.f32.mrf.mxu0 }
 0x12c   : > { %v403_v17 = vadd.f32 %v3428_v5, %v402_v13 }
 0x12e   : > { %v420_v19 = vmax.f32 %v403_v17, 0.0 }
 0x130   : > { %v479_v21 = vsel %vm458_vm11, %v420_v19, 0.0  ;;  %v2952_v27 = vpack.c.bf16 %v420_v19, %v419_v14  ;;  %vm449_vm11 = vcmp.ge.s32.totalorder %v442_v7, 0  ;;  %v2738_v19 = vld [vmem:[%s3933_s2 + $0x68] sm:$0xff] }
 0x131   : > { %v3457_v0 = vpack.c.bf16 %v479_v21, %v478_v20  ;;  %1513 = vmatpush.bf16.msrb.mxu1 %v2738_v19  ;;  %v2745_v21 = vld [vmem:[%s3933_s2 + $0xa0] sm:$0xff] }
 0x132   : > { %2953 = vmatmul.msk.bf16.vlgmr.msra.gmra.mxu2 %vm2951_vm12, %v2952_v27  ;;  %vm456_vm12 = vcmp.lt.s32.totalorder %v442_v7, 200  ;;  %1691 = vmatpush.bf16.msrb.mxu3 %v2745_v21 }
 0x133   : > { %2753 = vst [vmem:[#allocation2] sm:$0xff] %v3457_v0   ;;  %v405_v25 = vpop.f32.mrf.mxu0  ;;  %v560_v46 = vshll.u32 %v3457_v0, 16  ;;  %v558_v59 = vshrl.u32 %v3457_v0, 16  ;;  %vm463_vm13 = vmand %vm449_vm11, %vm456_vm12 }
 0x134   : > { %v406_v30 = vadd.f32 %v3428_v5, %v405_v25  ;;  %v2737_v25 = vld [vmem:[%s3933_s2 + $0x60] sm:$0xff] }
 0x135   : > { %v562_v54 = vrot.slane %v560_v46, 1  ;;  %1514 = vmatpush.bf16.msrb.mxu1 %v2737_v25  ;;  %v2742_v46 = vld [vmem:[%s3933_s2 + $0x88] sm:$0xff] }
 0x136   : > { %v421_v33 = vmax.f32 %v406_v30, 0.0  ;;  %1692 = vmatpush.bf16.msrb.mxu3 %v2744_v28 }
 0x137   : > { %v563_v10 = vor.u32 %v562_v54, %v558_v59 }
 0x138   : > { %v480_v26 = vsel %vm459_vm3, %v421_v33, 0.0 }
 0x139   : > { %1515 = vmatpush.bf16.msrb.mxu1 %v2736_v37 }
 0x13a   : > { %v2789_v43 = vld [vmem:[#allocation2] sm:$0xf0]  ;;  %v2790_v44 = vld [vmem:[#allocation2] sm:$0xe] }
 0x13b   : > { %v407_v2 = vpop.f32.mrf.mxu0  ;;  %v2791_v48 = vor.u32 %v2790_v44, %v2789_v43  ;;  %v2735_v43 = vld [vmem:[%s3933_s2 + $0x50] sm:$0xff] }
 0x13c   : > { %v408_v35 = vadd.f32 %v3428_v5, %v407_v2 }
 0x13d   : > { %v756_v58 = vrot.slane %v2791_v48, 1  ;;  %1516 = vmatpush.bf16.msrb.mxu1 %v2735_v43 }
 0x13e   : > { %v422_v36 = vmax.f32 %v408_v35, 0.0 }
 0x140   : > { %v481_v38 = vsel %vm460_vm4, %v422_v36, 0.0 }
 0x141   : > { %v2757_v31 = vpack.c.bf16 %v481_v38, %v480_v26  ;;  %v3556_v26 = vstv %s1310_s8  ;;  %s2798_s8 = smul.u32 48, %s3592_s13 }
 0x142   : > { %v1312_v44 = vadd.s32 %v3556_v26, %v3412_v60  ;;  %v1313_v45 = vadd.s32 %v3556_v26, %v3420_v63  ;;  %v2741_v60 = vld [vmem:[%s3933_s2 + $0x80] sm:$0xff]  ;;  %v1315_v12 = vadd.s32 %v3556_v26, %v3463_v23  ;;  %v1317_v25 = vadd.s32 %v3556_v26, %v3493_v40 }
 0x143   : > { %2787 = vst [vmem:[#allocation2 + $0x8] sm:$0xff] %v2757_v31   ;;  %v410_v42 = vpop.f32.mrf.mxu0  ;;  %v2743_v31 = vld [vmem:[%s3933_s2 + $0x90] sm:$0xff]  ;;  %v1318_v40 = vadd.s32 %v3556_v26, %v3514_v53  ;;  %s3679_s9 = scalar_lea.vmem [#allocation5], %s2798_s8  }
 0x144   : > { %v411_v49 = vadd.f32 %v3428_v5, %v410_v42  ;;  %1693 = vmatpush.bf16.msrb.mxu3 %v2743_v31  ;;  %vm1319_vm14 = vcmp.ge.s32.totalorder %v1312_v44, 0  ;;  %vm1326_vm15 = vcmp.lt.s32.totalorder %v1312_v44, 200  ;;  %vm1320_vm2 = vcmp.ge.s32.totalorder %v1313_v45, 0 }
 0x145   : > { %vm1327_vm3 = vcmp.lt.s32.totalorder %v1313_v45, 200  ;;  %vm3578_vm4 = vmand %vm1319_vm14, %vm1326_vm15  ;;  %vm1324_vm15 = vcmp.ge.s32.totalorder %v1317_v25, 0 }
 0x146   : > { %v423_v61 = vmax.f32 %v411_v49, 0.0  ;;  %v2734_v49 = vld [vmem:[%s3933_s2 + $0x48] sm:$0xff]  ;;  %vm3586_vm5 = vmand %vm1320_vm2, %vm1327_vm3  ;;  %vm1331_vm2 = vcmp.lt.s32.totalorder %v1317_v25, 200 }
 0x147   : > { %1517 = vmatpush.bf16.msrb.mxu1 %v2734_v49  ;;  %vm2954_vm6 = vmpackc.low %vm3586_vm5, %vm3578_vm4 }
 0x148   : > { %v482_v13 = vsel %vm461_vm9, %v423_v61, 0.0  ;;  %1694 = vmatpush.bf16.msrb.mxu3 %v2742_v46  ;;  %vm1322_vm9 = vcmp.ge.s32.totalorder %v1315_v12, 0 }
 0x14a   : > { %v2693_v50 = vld [vmem:[#allocation2 + $0x8] sm:$0xff] }
 0x14b   : > { %v412_v57 = vpop.f32.mrf.mxu0  ;;  %724 = vmatmul.bf16.gmra.mxu2 %v2693_v50  ;;  %v757_v4 = vrot.slane %v2693_v50, 1  ;;  %v565_v6 = vshll.u32 %v2693_v50, 16  ;;  %v569_v32 = vshrl.u32 %v2693_v50, 16 }
 0x14c   : > { %v413_v3 = vadd.f32 %v3428_v5, %v412_v57  ;;  %1695 = vmatpush.bf16.msrb.mxu3 %v2741_v60  ;;  %v2733_v57 = vld [vmem:[%s3933_s2 + $0x40] sm:$0xff] }
 0x14d   : > { %v758_v9 = vsel %vm331_vm1, %v756_v58, %v757_v4  ;;  %v567_v11 = vrot.slane %v565_v6, 1  ;;  %1518 = vmatpush.bf16.msrb.mxu1 %v2733_v57 }
 0x14e   : > { %v424_v8 = vmax.f32 %v413_v3, 0.0  ;;  %822 = vmatmul.bf16.vlgmr.msra.gmra.mxu3 %v758_v9 }
 0x14f   : > { %v568_v15 = vsel %vm291_vm0, %v563_v10, %v567_v11  ;;  %v571_v35 = vor.u32 %v569_v32, %v567_v11  ;;  %v1314_v11 = vadd.s32 %v3556_v26, %v3460_v22 }
 0x150   : > { %v483_v14 = vsel %vm462_vm10, %v424_v8, 0.0  ;;  %644 = vmatmul.bf16.vlgmr.msra.gmra.mxu1 %v568_v15  ;;  %vm1329_vm10 = vcmp.lt.s32.totalorder %v1315_v12, 200 }
 0x151   : > { %v2762_v17 = vpack.c.bf16 %v483_v14, %v482_v13  ;;  %vm1321_vm7 = vcmp.ge.s32.totalorder %v1314_v11, 0  ;;  %vm1328_vm8 = vcmp.lt.s32.totalorder %v1314_v11, 200  ;;  %vm1336_vm12 = vmand %vm1322_vm9, %vm1329_vm10  ;;  %vm1122_vm9 = vcmask 1043459  }
 0x152   : > { %vm1335_vm11 = vmand %vm1321_vm7, %vm1328_vm8  ;;  %vm1120_vm8 = vcmask 1042434   ;;  %vm1124_vm10 = vcmask 1044484  }
 0x153   : > { %2788 = vst [vmem:[#allocation2 + $0x10] sm:$0xff] %v2762_v17   ;;  %v415_v62 = vpop.f32.mrf.mxu0 }
 0x154   : > { %v416_v20 = vadd.f32 %v3428_v5, %v415_v62 }
 0x156   : > { %v425_v0 = vmax.f32 %v416_v20, 0.0 }
 0x158   : > { %v484_v24 = vsel %vm463_vm13, %v425_v0, 0.0  ;;  %v1316_v0 = vadd.s32 %v3556_v26, %v3490_v39 }
 0x159   : > { %v491_v27 = vpack.c.bf16 %v484_v24, %v484_v24 }
 0x15a   : > { %v2694_v1 = vld [vmem:[#allocation2 + $0x10] sm:$0xff]  ;;  %vm1323_vm13 = vcmp.ge.s32.totalorder %v1316_v0, 0  ;;  %vm1330_vm14 = vcmp.lt.s32.totalorder %v1316_v0, 200 }
 0x15b   : > { %498 = vst [vmem:[#allocation2 + $0x18] sm:$0x1] %v491_v27  ;;  %v417_v29 = vpop.f32.mrf.mxu0  ;;  %729 = vmatmul.bf16.gmra.mxu2 %v2694_v1  ;;  %v759_v30 = vrot.slane %v2694_v1, 1  ;;  %v573_v2 = vshll.u32 %v2694_v1, 16  ;;  %v577_v55 = vshrl.u32 %v2694_v1, 16  ;;  %vm1337_vm3 = vmand %vm1323_vm13, %vm1330_vm14  ;;  %vm1130_vm13 = vcmask 1047559  }
 0x15d   : > { %v760_v33 = vsel %vm331_vm1, %v757_v4, %v759_v30  ;;  %v575_v36 = vrot.slane %v573_v2, 1 }
 0x15e   : > { %827 = vmatmul.bf16.gmra.mxu3 %v760_v33 }
 0x15f   : > { %v576_v16 = vsel %vm291_vm0, %v571_v35, %v575_v36  ;;  %v579_v3 = vor.u32 %v577_v55, %v575_v36 }
 0x160   : > { %649 = vmatmul.bf16.gmra.mxu1 %v576_v16 }
 0x162   : > { %v521_v38 = vld [vmem:[#allocation2 + $0x18] sm:$0x1] }
 0x163   : > { %v1284_v41 = vpop.f32.mrf.mxu0  ;;  %v552_v42 = vunpack.c.l.b16 %v521_v38 }
 0x164   : > { %v1285_v47 = vadd.f32 %v3428_v5, %v1284_v41 }
 0x165   : > { %v556_v34 = vpack.c.b16 %v552_v42, %v552_v42 }
 0x166   : > { %v1303_v52 = vmax.f32 %v1285_v47, 0.0 }
 0x167   : > { %v581_v48 = vshll.u32 %v556_v34, 16  ;;  %v761_v63 = vrot.slane %v556_v34, 1 }
 0x168   : > { %v1354_v4 = vsel %vm3578_vm4, %v1303_v52, 0.0  ;;  %vm1338_vm4 = vmand %vm1324_vm15, %vm1331_vm2 }
 0x169   : > { %v583_v56 = vrot.slane %v581_v48, 1  ;;  %v762_v61 = vsel %vm331_vm1, %v759_v30, %v761_v63 }
 0x16b   : > { %v1286_v51 = vpop.f32.mrf.mxu0  ;;  %v584_v7 = vsel %vm291_vm0, %v579_v3, %v583_v56 }
 0x16c   : > { %v1287_v54 = vadd.f32 %v3428_v5, %v1286_v51 }
 0x16e   : > { %v1304_v59 = vmax.f32 %v1287_v54, 0.0  ;;  %832 = vmatmul.bf16.gmra.mxu3 %v762_v61 }
 0x170   : > { %v1355_v6 = vsel %vm3586_vm5, %v1304_v59, 0.0  ;;  %654 = vmatmul.bf16.gmra.mxu1 %v584_v7  ;;  %v2955_v10 = vpack.c.bf16 %v1304_v59, %v1303_v52  ;;  %vm1325_vm5 = vcmp.ge.s32.totalorder %v1318_v40, 0 }
 0x171   : > { %v2771_v8 = vpack.c.bf16 %v1355_v6, %v1354_v4 }
 0x172   : > { %2956 = vmatmul.msk.bf16.vlgmr.msrb.gmra.mxu2 %vm2954_vm6, %v2955_v10  ;;  %vm1332_vm6 = vcmp.lt.s32.totalorder %v1318_v40, 200  ;;  %v3627_v10 = vld [vmem:[%s3934_s3 + $0x1] ss:$0 sm:$0xff] }
 0x173   : > { %2772 = vst [vmem:[#allocation2] sm:$0xff] %v2771_v8   ;;  %v1289_v9 = vpop.f32.mrf.mxu0  ;;  %v1435_v24 = vshll.u32 %v2771_v8, 16  ;;  %v1433_v30 = vshrl.u32 %v2771_v8, 16  ;;  %vm1339_vm7 = vmand %vm1325_vm5, %vm1332_vm6 }
 0x174   : > { %v1290_v13 = vadd.f32 %v3428_v5, %v1289_v9 }
 0x175   : > { %v1437_v1 = vrot.slane %v1435_v24, 1 }
 0x176   : > { %v1305_v15 = vmax.f32 %v1290_v13, 0.0 }
 0x177   : > { %v1438_v16 = vor.u32 %v1437_v1, %v1433_v30 }
 0x178   : > { %v1356_v18 = vsel %vm1335_vm11, %v1305_v15, 0.0  ;;  %v3633_v15 = vld [vmem:[%s3934_s3 + $0x2] ss:$0 sm:$0xff]  ;;  %vm1126_vm11 = vcmask 1045509  }
 0x17a   : > { %v2794_v21 = vld [vmem:[#allocation2] sm:$0xf0]  ;;  %v2795_v23 = vld [vmem:[#allocation2] sm:$0xe] }
 0x17b   : > { %v1291_v14 = vpop.f32.mrf.mxu0  ;;  %v2796_v27 = vor.u32 %v2795_v23, %v2794_v21 }
 0x17c   : > { %v1292_v17 = vadd.f32 %v3428_v5, %v1291_v14 }
 0x17d   : > { %v1630_v2 = vrot.slane %v2796_v27, 1 }
 0x17e   : > { %v1306_v62 = vmax.f32 %v1292_v17, 0.0 }
 0x180   : > { %v1357_v19 = vsel %vm1336_vm12, %v1306_v62, 0.0  ;;  %vm1128_vm12 = vcmask 1046534  }
 0x181   : > { %v2776_v20 = vpack.c.bf16 %v1357_v19, %v1356_v18  ;;  %v3638_v18 = vld [vmem:[%s3934_s3 + $0x3] ss:$0 sm:$0xff] }
 0x183   : > { %2792 = vst [vmem:[#allocation2 + $0x8] sm:$0xff] %v2776_v20   ;;  %v1294_v22 = vpop.f32.mrf.mxu0 }
 0x184   : > { %v1295_v28 = vadd.f32 %v3428_v5, %v1294_v22 }
 0x186   : > { %v1307_v33 = vmax.f32 %v1295_v28, 0.0 }
 0x188   : > { %v1358_v41 = vsel %vm1337_vm3, %v1307_v33, 0.0 }
 0x18a   : > { %v2723_v29 = vld [vmem:[#allocation2 + $0x8] sm:$0xff] }
 0x18b   : > { %v1296_v32 = vpop.f32.mrf.mxu0  ;;  %1599 = vmatmul.bf16.gmra.mxu2 %v2723_v29  ;;  %v1631_v35 = vrot.slane %v2723_v29, 1  ;;  %v1440_v36 = vshll.u32 %v2723_v29, 16  ;;  %v1444_v60 = vshrl.u32 %v2723_v29, 16 }
 0x18c   : > { %v1297_v39 = vadd.f32 %v3428_v5, %v1296_v32 }
 0x18d   : > { %v1632_v38 = vsel %vm331_vm1, %v1630_v2, %v1631_v35  ;;  %v1442_v31 = vrot.slane %v1440_v36, 1 }
 0x18e   : > { %v1308_v37 = vmax.f32 %v1297_v39, 0.0  ;;  %1696 = vmatmul.bf16.vlgmr.msrb.gmra.mxu3 %v1632_v38 }
 0x18f   : > { %v1443_v43 = vsel %vm291_vm0, %v1438_v16, %v1442_v31  ;;  %v1446_v52 = vor.u32 %v1444_v60, %v1442_v31 }
 0x190   : > { %v1359_v42 = vsel %vm1338_vm4, %v1308_v37, 0.0  ;;  %1519 = vmatmul.bf16.vlgmr.msrb.gmra.mxu1 %v1443_v43 }
 0x191   : > { %v2781_v44 = vpack.c.bf16 %v1359_v42, %v1358_v41 }
 0x193   : > { %2793 = vst [vmem:[#allocation2 + $0x10] sm:$0xff] %v2781_v44   ;;  %v1299_v34 = vpop.f32.mrf.mxu0 }
 0x194   : > { %v1300_v45 = vadd.f32 %v3428_v5, %v1299_v34 }
 0x196   : > { %v1309_v53 = vmax.f32 %v1300_v45, 0.0 }
 0x198   : > { %v1360_v26 = vsel %vm1339_vm7, %v1309_v53, 0.0 }
 0x199   : > { %v1367_v46 = vpack.c.bf16 %v1360_v26, %v1360_v26 }
 0x19a   : > { %v2724_v47 = vld [vmem:[#allocation2 + $0x10] sm:$0xff] }
 0x19b   : > { %1374 = vst [vmem:[#allocation2 + $0x18] sm:$0x1] %v1367_v46  ;;  %v1301_v48 = vpop.f32.mrf.mxu0  ;;  %1604 = vmatmul.bf16.gmra.mxu2 %v2724_v47  ;;  %v1633_v49 = vrot.slane %v2724_v47, 1  ;;  %v1448_v63 = vshll.u32 %v2724_v47, 16  ;;  %v1452_v59 = vshrl.u32 %v2724_v47, 16 }
 0x19d   : > { %v1634_v51 = vsel %vm331_vm1, %v1631_v35, %v1633_v49  ;;  %v1450_v50 = vrot.slane %v1448_v63, 1 }
 0x19e   : > { %1701 = vmatmul.bf16.gmra.mxu3 %v1634_v51 }
 0x19f   : > { %v1451_v54 = vsel %vm291_vm0, %v1446_v52, %v1450_v50  ;;  %v1454_v4 = vor.u32 %v1452_v59, %v1450_v50 }
 0x1a0   : > { %1524 = vmatmul.bf16.gmra.mxu1 %v1451_v54 }
 0x1a2   : > { %v1397_v5 = vld [vmem:[#allocation2 + $0x18] sm:$0x1] }
 0x1a3   : > { %v1427_v55 = vunpack.c.l.b16 %v1397_v5 }
 0x1a5   : > { %v1431_v56 = vpack.c.b16 %v1427_v55, %v1427_v55 }
 0x1a7   : > { %v1456_v57 = vshll.u32 %v1431_v56, 16  ;;  %v1635_v58 = vrot.slane %v1431_v56, 1 }
 0x1a9   : > { %v1458_v61 = vrot.slane %v1456_v57, 1  ;;  %v1636_v3 = vsel %vm331_vm1, %v1633_v49, %v1635_v58  ;;  %vm1118_vm1 = vcmask 1041409  }
 0x1ab   : > { %v1459_v6 = vsel %vm291_vm0, %v1454_v4, %v1458_v61  ;;  %vm925_vm0 = vcmask 1041408  }
 0x1ae   : > { %1706 = vmatmul.bf16.gmra.mxu3 %v1636_v3 }
 0x1b0   : > { %1529 = vmatmul.bf16.gmra.mxu1 %v1459_v6 }
 0x1b5   : > { %v720_v7 = vpop.f32.mrf.mxu2 }
 0x1bd   : > { %v722_v13 = vpop.f32.mrf.mxu2 }
 0x1cd   : > { %v645_v8 = vpop.f32.mrf.mxu1 }
 0x1ce   : > { %v721_v9 = vadd.f32 %v720_v7, %v645_v8  ;;  %v725_v0 = vpop.f32.mrf.mxu2 }
 0x1d1   : > { %v823_v11 = vpop.f32.mrf.mxu3 }
 0x1d2   : > { %v838_v12 = vadd.f32 %v823_v11, %v721_v9 }
 0x1d4   : > { %v845_v14 = vadd.f32 %v3627_v10, %v838_v12 }
 0x1d5   : > { %v647_v17 = vpop.f32.mrf.mxu1 }
 0x1d6   : > { %v851_v62 = vmax.f32 %v845_v14, 0.0  ;;  %v723_v20 = vadd.f32 %v722_v13, %v647_v17  ;;  %v727_v60 = vpop.f32.mrf.mxu2 }
 0x1d8   : > { %v858_v19 = vmul.f32 %v3633_v15, %v851_v62 }
 0x1d9   : > { %v825_v22 = vpop.f32.mrf.mxu3 }
 0x1da   : > { %v865_v21 = vadd.f32 %v3638_v18, %v858_v19  ;;  %v839_v23 = vadd.f32 %v825_v22, %v723_v20 }
 0x1dc   : > { %v871_v24 = vmax.f32 %v865_v21, 0.0  ;;  %v846_v25 = vadd.f32 %v3627_v10, %v839_v23 }
 0x1dd   : > { %v650_v27 = vpop.f32.mrf.mxu1 }
 0x1de   : > { %877 = vst [vmem:[%s3644_s30] sm:$0xff] %v871_v24  ;;  %v889_v28 = vrot.slane %v871_v24, 2  ;;  %v890_v1 = vrot.slane %v871_v24, 4  ;;  %v891_v29 = vrot.slane %v871_v24, 6  ;;  %v926_v30 = vsel %vm925_vm0, %v871_v24, -inf }
 0x1df   : > { %v927_v32 = vrot.slane %v926_v30, 4  ;;  %v852_v2 = vmax.f32 %v846_v25, 0.0  ;;  %v726_v36 = vadd.f32 %v725_v0, %v650_v27 }
 0x1e0   : > { %v933_v33 = vsel %vm925_vm0, %v889_v28, -inf  ;;  %v940_v39 = vsel %vm925_vm0, %v890_v1, -inf  ;;  %v947_v35 = vsel %vm925_vm0, %v891_v29, -inf }
 0x1e1   : > { %v928_v40 = vmax.f32 %v926_v30, %v927_v32  ;;  %v934_v16 = vrot.slane %v933_v33, 4  ;;  %v941_v37 = vrot.slane %v940_v39, 4  ;;  %v948_v38 = vrot.slane %v947_v35, 4  ;;  %v828_v31 = vpop.f32.mrf.mxu3 }
 0x1e2   : > { %v859_v41 = vmul.f32 %v3633_v15, %v852_v2  ;;  %v840_v42 = vadd.f32 %v828_v31, %v726_v36  ;;  %v730_v2 = vpop.f32.mrf.mxu2 }
 0x1e3   : > { %v929_v43 = vrot.slane %v928_v40, 2  ;;  %v935_v44 = vmax.f32 %v933_v33, %v934_v16  ;;  %v942_v34 = vmax.f32 %v940_v39, %v941_v37  ;;  %v949_v45 = vmax.f32 %v947_v35, %v948_v38 }
 0x1e4   : > { %v866_v53 = vadd.f32 %v3638_v18, %v859_v41  ;;  %v847_v26 = vadd.f32 %v3627_v10, %v840_v42 }
 0x1e5   : > { %v930_v46 = vmax.f32 %v928_v40, %v929_v43  ;;  %v936_v47 = vrot.slane %v935_v44, 2  ;;  %v943_v48 = vrot.slane %v942_v34, 2  ;;  %v950_v49 = vrot.slane %v949_v45, 2  ;;  %v652_v63 = vpop.f32.mrf.mxu1 }
 0x1e6   : > { %v872_v51 = vmax.f32 %v866_v53, 0.0  ;;  %v853_v52 = vmax.f32 %v847_v26, 0.0  ;;  %v728_v6 = vadd.f32 %v727_v60, %v652_v63 }
 0x1e7   : > { %v931_v50 = vrot.slane %v930_v46, 1  ;;  %v937_v54 = vmax.f32 %v935_v44, %v936_v47  ;;  %v944_v5 = vmax.f32 %v942_v34, %v943_v48  ;;  %v951_v55 = vmax.f32 %v949_v45, %v950_v49 }
 0x1e8   : > { %878 = vst [vmem:[%s3644_s30 + $0x8] sm:$0xff] %v872_v51  ;;  %v892_v56 = vrot.slane %v872_v51, 2  ;;  %v893_v57 = vrot.slane %v872_v51, 4  ;;  %v894_v58 = vrot.slane %v872_v51, 6  ;;  %v954_v59 = vsel %vm925_vm0, %v872_v51, -inf }
 0x1e9   : > { %v932_v61 = vmax.f32 %v930_v46, %v931_v50  ;;  %v938_v3 = vrot.slane %v937_v54, 1  ;;  %v945_v4 = vrot.slane %v944_v5, 1  ;;  %v830_v7 = vpop.f32.mrf.mxu3  ;;  %v955_v8 = vrot.slane %v954_v59, 4 }
 0x1ea   : > { %v961_v9 = vsel %vm925_vm0, %v892_v56, -inf  ;;  %v968_v11 = vsel %vm925_vm0, %v893_v57, -inf  ;;  %v975_v12 = vsel %vm925_vm0, %v894_v58, -inf  ;;  %v952_v17 = vrot.slane %v951_v55, 1 }
 0x1eb   : > { %v939_v13 = vmax.f32 %v937_v54, %v938_v3  ;;  %v946_v14 = vmax.f32 %v944_v5, %v945_v4  ;;  %v962_v62 = vrot.slane %v961_v9, 4  ;;  %v956_v19 = vmax.f32 %v954_v59, %v955_v8 }
 0x1ec   : > { %v969_v20 = vrot.slane %v968_v11, 4  ;;  %v976_v22 = vrot.slane %v975_v12, 4  ;;  %v860_v21 = vmul.f32 %v3633_v15, %v853_v52  ;;  %v841_v24 = vadd.f32 %v830_v7, %v728_v6 }
 0x1ed   : > { %v1119_v23 = vsel %vm1118_vm1, %v939_v13, %v932_v61  ;;  %v963_v0 = vmax.f32 %v961_v9, %v962_v62  ;;  %v655_v25 = vpop.f32.mrf.mxu1  ;;  %v957_v28 = vrot.slane %v956_v19, 2  ;;  %v953_v30 = vmax.f32 %v951_v55, %v952_v17 }
 0x1ee   : > { %v1121_v27 = vsel %vm1120_vm8, %v946_v14, %v1119_v23  ;;  %v970_v1 = vmax.f32 %v968_v11, %v969_v20  ;;  %v977_v29 = vmax.f32 %v975_v12, %v976_v22  ;;  %v867_v33 = vadd.f32 %v3638_v18, %v860_v21 }
 0x1ef   : > { %v964_v32 = vrot.slane %v963_v0, 2  ;;  %v848_v39 = vadd.f32 %v3627_v10, %v841_v24  ;;  %v958_v35 = vmax.f32 %v956_v19, %v957_v28  ;;  %v731_v16 = vadd.f32 %v730_v2, %v655_v25  ;;  %v732_v19 = vpop.f32.mrf.mxu2 }
 0x1f0   : > { %v971_v36 = vrot.slane %v970_v1, 2  ;;  %v978_v40 = vrot.slane %v977_v29, 2  ;;  %v1123_v37 = vsel %vm1122_vm9, %v953_v30, %v1121_v27  ;;  %v873_v31 = vmax.f32 %v867_v33, 0.0 }
 0x1f1   : > { %v965_v38 = vmax.f32 %v963_v0, %v964_v32  ;;  %v854_v41 = vmax.f32 %v848_v39, 0.0  ;;  %v833_v42 = vpop.f32.mrf.mxu3  ;;  %v959_v43 = vrot.slane %v958_v35, 1 }
 0x1f2   : > { %v972_v44 = vmax.f32 %v970_v1, %v971_v36  ;;  %v979_v34 = vmax.f32 %v977_v29, %v978_v40  ;;  %v842_v45 = vadd.f32 %v833_v42, %v731_v16  ;;  %879 = vst [vmem:[%s3644_s30 + $0x10] sm:$0xff] %v873_v31  ;;  %v895_v26 = vrot.slane %v873_v31, 2 }
 0x1f3   : > { %v966_v53 = vrot.slane %v965_v38, 1  ;;  %v896_v46 = vrot.slane %v873_v31, 4  ;;  %v897_v47 = vrot.slane %v873_v31, 6  ;;  %v960_v48 = vmax.f32 %v958_v35, %v959_v43 }
 0x1f4   : > { %v973_v49 = vrot.slane %v972_v44, 1  ;;  %v980_v60 = vrot.slane %v979_v34, 1  ;;  %v982_v63 = vsel %vm925_vm0, %v873_v31, -inf  ;;  %v989_v50 = vsel %vm925_vm0, %v895_v26, -inf }
 0x1f5   : > { %v967_v51 = vmax.f32 %v965_v38, %v966_v53  ;;  %v983_v52 = vrot.slane %v982_v63, 4  ;;  %v996_v54 = vsel %vm925_vm0, %v896_v46, -inf  ;;  %v1125_v56 = vsel %vm1124_vm10, %v960_v48, %v1123_v37  ;;  %v657_v9 = vpop.f32.mrf.mxu1 }
 0x1f6   : > { %v974_v5 = vmax.f32 %v972_v44, %v973_v49  ;;  %v981_v55 = vmax.f32 %v979_v34, %v980_v60  ;;  %v990_v57 = vrot.slane %v989_v50, 4  ;;  %v997_v61 = vrot.slane %v996_v54, 4 }
 0x1f7   : > { %v1127_v58 = vsel %vm1126_vm11, %v967_v51, %v1125_v56  ;;  %v984_v59 = vmax.f32 %v982_v63, %v983_v52  ;;  %v1003_v3 = vsel %vm925_vm0, %v897_v47, -inf  ;;  %v861_v8 = vmul.f32 %v3633_v15, %v854_v41 }
 0x1f8   : > { %v1129_v4 = vsel %vm1128_vm12, %v974_v5, %v1127_v58  ;;  %v991_v6 = vmax.f32 %v989_v50, %v990_v57  ;;  %v1004_v7 = vrot.slane %v1003_v3, 4  ;;  %v998_v13 = vmax.f32 %v996_v54, %v997_v61 }
 0x1f9   : > { %v1131_v11 = vsel %vm1130_vm13, %v981_v55, %v1129_v4  ;;  %v985_v12 = vrot.slane %v984_v59, 2  ;;  %v849_v14 = vadd.f32 %v3627_v10, %v842_v45  ;;  %v868_v20 = vadd.f32 %v3638_v18, %v861_v8  ;;  %v835_v22 = vpop.f32.mrf.mxu3 }
 0x1fa   : > { %1149 = vst [vmem:[%s3679_s9] sm:$0xff] %v1131_v11  ;;  %v992_v17 = vrot.slane %v991_v6, 2  ;;  %v1005_v62 = vmax.f32 %v1003_v3, %v1004_v7  ;;  %v999_v23 = vrot.slane %v998_v13, 2  ;;  %v733_v24 = vadd.f32 %v732_v19, %v657_v9 }
 0x1fb   : > { %v986_v21 = vmax.f32 %v984_v59, %v985_v12  ;;  %v855_v0 = vmax.f32 %v849_v14, 0.0  ;;  %v874_v28 = vmax.f32 %v868_v20, 0.0 }
 0x1fc   : > { %v993_v25 = vmax.f32 %v991_v6, %v992_v17  ;;  %v1006_v27 = vrot.slane %v1005_v62, 2  ;;  %v1000_v29 = vmax.f32 %v998_v13, %v999_v23  ;;  %v843_v32 = vadd.f32 %v835_v22, %v733_v24 }
 0x1fd   : > { %v987_v1 = vrot.slane %v986_v21, 1  ;;  %v862_v30 = vmul.f32 %v3633_v15, %v855_v0  ;;  %880 = vst [vmem:[%s3644_s30 + $0x18] sm:$0xff] %v874_v28  ;;  %v898_v39 = vrot.slane %v874_v28, 2  ;;  %v899_v35 = vrot.slane %v874_v28, 4 }
 0x1fe   : > { %v994_v2 = vrot.slane %v993_v25, 1  ;;  %v1007_v33 = vmax.f32 %v1005_v62, %v1006_v27  ;;  %v1001_v40 = vrot.slane %v1000_v29, 1  ;;  %v900_v16 = vrot.slane %v874_v28, 6 }
 0x1ff   : > { %v988_v36 = vmax.f32 %v986_v21, %v987_v1  ;;  %v1010_v37 = vsel %vm925_vm0, %v874_v28, -inf  ;;  %v1017_v42 = vsel %vm925_vm0, %v898_v39, -inf  ;;  %v1024_v34 = vsel %vm925_vm0, %v899_v35, -inf }
 0x200   : > { %v995_v38 = vmax.f32 %v993_v25, %v994_v2  ;;  %v1008_v31 = vrot.slane %v1007_v33, 1  ;;  %v1011_v41 = vrot.slane %v1010_v37, 4  ;;  %v1002_v43 = vmax.f32 %v1000_v29, %v1001_v40  ;;  %v1595_v25 = vpop.f32.mrf.mxu2 }
 0x201   : > { %v1018_v44 = vrot.slane %v1017_v42, 4  ;;  %v1031_v45 = vsel %vm925_vm0, %v900_v16, -inf  ;;  %v1025_v46 = vrot.slane %v1024_v34, 4  ;;  %v869_v60 = vadd.f32 %v3638_v18, %v862_v30 }
 0x202   : > { %v1132_v53 = vsel %vm1118_vm1, %v995_v38, %v988_v36  ;;  %v1012_v26 = vmax.f32 %v1010_v37, %v1011_v41  ;;  %v1032_v49 = vrot.slane %v1031_v45, 4  ;;  %v1009_v63 = vmax.f32 %v1007_v33, %v1008_v31 }
 0x203   : > { %v1133_v47 = vsel %vm1120_vm8, %v1002_v43, %v1132_v53  ;;  %v1019_v48 = vmax.f32 %v1017_v42, %v1018_v44  ;;  %v1026_v52 = vmax.f32 %v1024_v34, %v1025_v46  ;;  %v850_v50 = vadd.f32 %v3627_v10, %v843_v32 }
 0x204   : > { %v1013_v51 = vrot.slane %v1012_v26, 2  ;;  %v1033_v5 = vmax.f32 %v1031_v45, %v1032_v49  ;;  %v875_v55 = vmax.f32 %v869_v60, 0.0  ;;  %v1134_v56 = vsel %vm1122_vm9, %v1009_v63, %v1133_v47 }
 0x205   : > { %v1020_v54 = vrot.slane %v1019_v48, 2  ;;  %v1027_v58 = vrot.slane %v1026_v52, 2  ;;  %v856_v59 = vmax.f32 %v850_v50, 0.0 }
 0x206   : > { %v1014_v57 = vmax.f32 %v1012_v26, %v1013_v51  ;;  %v1034_v3 = vrot.slane %v1033_v5, 2  ;;  %881 = vst [vmem:[%s3644_s30 + $0x20] sm:$0xff] %v875_v55  ;;  %v901_v4 = vrot.slane %v875_v55, 2  ;;  %v902_v6 = vrot.slane %v875_v55, 4 }
 0x207   : > { %v1021_v61 = vmax.f32 %v1019_v48, %v1020_v54  ;;  %v1028_v8 = vmax.f32 %v1026_v52, %v1027_v58  ;;  %v903_v9 = vrot.slane %v875_v55, 6  ;;  %v1038_v11 = vsel %vm925_vm0, %v875_v55, -inf }
 0x208   : > { %v1015_v7 = vrot.slane %v1014_v57, 1  ;;  %v1035_v13 = vmax.f32 %v1033_v5, %v1034_v3  ;;  %v1039_v14 = vrot.slane %v1038_v11, 4  ;;  %v1045_v17 = vsel %vm925_vm0, %v901_v4, -inf  ;;  %v1597_v5 = vpop.f32.mrf.mxu2 }
 0x209   : > { %v1022_v12 = vrot.slane %v1021_v61, 1  ;;  %v1029_v19 = vrot.slane %v1028_v8, 1  ;;  %v1046_v20 = vrot.slane %v1045_v17, 4  ;;  %v1052_v22 = vsel %vm925_vm0, %v902_v6, -inf }
 0x20a   : > { %v1016_v62 = vmax.f32 %v1014_v57, %v1015_v7  ;;  %v1036_v23 = vrot.slane %v1035_v13, 1  ;;  %v1040_v0 = vmax.f32 %v1038_v11, %v1039_v14  ;;  %v1053_v24 = vrot.slane %v1052_v22, 4 }
 0x20b   : > { %v1023_v21 = vmax.f32 %v1021_v61, %v1022_v12  ;;  %v1030_v27 = vmax.f32 %v1028_v8, %v1029_v19  ;;  %v1047_v1 = vmax.f32 %v1045_v17, %v1046_v20  ;;  %v1059_v29 = vsel %vm925_vm0, %v903_v9, -inf }
 0x20c   : > { %v1135_v28 = vsel %vm1124_vm10, %v1016_v62, %v1134_v56  ;;  %v1037_v30 = vmax.f32 %v1035_v13, %v1036_v23  ;;  %v1041_v2 = vrot.slane %v1040_v0, 2  ;;  %v1054_v33 = vmax.f32 %v1052_v22, %v1053_v24 }
 0x20d   : > { %v1136_v32 = vsel %vm1126_vm11, %v1023_v21, %v1135_v28  ;;  %v1520_v39 = vpop.f32.mrf.mxu1  ;;  %v1048_v36 = vrot.slane %v1047_v1, 2  ;;  %v1060_v40 = vrot.slane %v1059_v29, 4  ;;  %v863_v16 = vmul.f32 %v3633_v15, %v856_v59 }
 0x20e   : > { %v1137_v35 = vsel %vm1128_vm12, %v1030_v27, %v1136_v32  ;;  %v1042_v38 = vmax.f32 %v1040_v0, %v1041_v2  ;;  %v1055_v31 = vrot.slane %v1054_v33, 2  ;;  %v1596_v44 = vadd.f32 %v1595_v25, %v1520_v39 }
 0x20f   : > { %v1138_v37 = vsel %vm1130_vm13, %v1037_v30, %v1137_v35  ;;  %v1049_v41 = vmax.f32 %v1047_v1, %v1048_v36  ;;  %v1061_v42 = vmax.f32 %v1059_v29, %v1060_v40  ;;  %v870_v43 = vadd.f32 %v3638_v18, %v863_v16 }
 0x210   : > { %1150 = vst [vmem:[%s3679_s9 + $0x8] sm:$0xff] %v1138_v37  ;;  %v1043_v34 = vrot.slane %v1042_v38, 1  ;;  %v1056_v45 = vmax.f32 %v1054_v33, %v1055_v31  ;;  %v1600_v30 = vpop.f32.mrf.mxu2 }
 0x211   : > { %v1697_v53 = vpop.f32.mrf.mxu3  ;;  %v1050_v26 = vrot.slane %v1049_v41, 1  ;;  %v1062_v46 = vrot.slane %v1061_v42, 2  ;;  %v876_v47 = vmax.f32 %v870_v43, 0.0 }
 0x212   : > { %v1712_v48 = vadd.f32 %v1697_v53, %v1596_v44  ;;  %v1057_v49 = vrot.slane %v1056_v45, 1  ;;  %v1044_v57 = vmax.f32 %v1042_v38, %v1043_v34 }
 0x213   : > { %v1063_v60 = vmax.f32 %v1061_v42, %v1062_v46  ;;  %882 = vst [vmem:[%s3644_s30 + $0x28] sm:$0xff] %v876_v47  ;;  %v904_v63 = vrot.slane %v876_v47, 2  ;;  %v905_v51 = vrot.slane %v876_v47, 4  ;;  %v1051_v52 = vmax.f32 %v1049_v41, %v1050_v26 }
 0x214   : > { %v906_v50 = vrot.slane %v876_v47, 6  ;;  %v1066_v54 = vsel %vm925_vm0, %v876_v47, -inf  ;;  %v1718_v55 = vadd.f32 %v3627_v10, %v1712_v48  ;;  %v1058_v61 = vmax.f32 %v1056_v45, %v1057_v49 }
 0x215   : > { %v1522_v56 = vpop.f32.mrf.mxu1  ;;  %v1067_v58 = vrot.slane %v1066_v54, 4  ;;  %v1073_v59 = vsel %vm925_vm0, %v904_v63, -inf  ;;  %v1080_v4 = vsel %vm925_vm0, %v905_v51, -inf  ;;  %v1064_v7 = vrot.slane %v1063_v60, 1 }
 0x216   : > { %v1074_v3 = vrot.slane %v1073_v59, 4  ;;  %v1087_v6 = vsel %vm925_vm0, %v906_v50, -inf  ;;  %v1081_v9 = vrot.slane %v1080_v4, 4  ;;  %v1139_v12 = vsel %vm1118_vm1, %v1051_v52, %v1044_v57 }
 0x217   : > { %v1068_v8 = vmax.f32 %v1066_v54, %v1067_v58  ;;  %v1088_v11 = vrot.slane %v1087_v6, 4  ;;  %v1724_v14 = vmax.f32 %v1718_v55, 0.0  ;;  %v1598_v17 = vadd.f32 %v1597_v5, %v1522_v56 }
 0x218   : > { %v1075_v13 = vmax.f32 %v1073_v59, %v1074_v3  ;;  %v1082_v20 = vmax.f32 %v1080_v4, %v1081_v9  ;;  %v1140_v24 = vsel %vm1120_vm8, %v1058_v61, %v1139_v12  ;;  %v1065_v1 = vmax.f32 %v1063_v60, %v1064_v7  ;;  %v1602_v9 = vpop.f32.mrf.mxu2 }
 0x219   : > { %v1699_v62 = vpop.f32.mrf.mxu3  ;;  %v1069_v19 = vrot.slane %v1068_v8, 2  ;;  %v1089_v22 = vmax.f32 %v1087_v6, %v1088_v11  ;;  %v1730_v23 = vmul.f32 %v3633_v15, %v1724_v14 }
 0x21a   : > { %v1076_v21 = vrot.slane %v1075_v13, 2  ;;  %v1713_v0 = vadd.f32 %v1699_v62, %v1598_v17  ;;  %v1083_v27 = vrot.slane %v1082_v20, 2  ;;  %v1141_v40 = vsel %vm1122_vm9, %v1065_v1, %v1140_v24 }
 0x21b   : > { %v1070_v25 = vmax.f32 %v1068_v8, %v1069_v19  ;;  %v1090_v28 = vrot.slane %v1089_v22, 2  ;;  %v1736_v32 = vadd.f32 %v3638_v18, %v1730_v23 }
 0x21c   : > { %v1077_v29 = vmax.f32 %v1075_v13, %v1076_v21  ;;  %v1719_v2 = vadd.f32 %v3627_v10, %v1713_v0  ;;  %v1084_v35 = vmax.f32 %v1082_v20, %v1083_v27 }
 0x21d   : > { %v1525_v33 = vpop.f32.mrf.mxu1  ;;  %v1071_v39 = vrot.slane %v1070_v25, 1  ;;  %v1091_v36 = vmax.f32 %v1089_v22, %v1090_v28  ;;  %v1742_v37 = vmax.f32 %v1736_v32, 0.0 }
 0x21e   : > { %v1078_v16 = vrot.slane %v1077_v29, 1  ;;  %v1601_v38 = vadd.f32 %v1600_v30, %v1525_v33  ;;  %v1085_v41 = vrot.slane %v1084_v35, 1  ;;  %v1725_v43 = vmax.f32 %v1719_v2, 0.0 }
 0x21f   : > { %v1072_v31 = vmax.f32 %v1070_v25, %v1071_v39  ;;  %v1092_v42 = vrot.slane %v1091_v36, 1  ;;  %2663 = vst [vmem:[%s3644_s30 + $0x30] sm:$0xff] %v1742_v37  ;;  %v1761_v34 = vrot.slane %v1742_v37, 2  ;;  %v1762_v45 = vrot.slane %v1742_v37, 4 }
 0x220   : > { %v1079_v44 = vmax.f32 %v1077_v29, %v1078_v16  ;;  %v1763_v53 = vrot.slane %v1742_v37, 6  ;;  %v1086_v46 = vmax.f32 %v1084_v35, %v1085_v41  ;;  %v1797_v49 = vsel %vm925_vm0, %v1742_v37, -inf }
 0x221   : > { %v1702_v26 = vpop.f32.mrf.mxu3  ;;  %v1093_v47 = vmax.f32 %v1091_v36, %v1092_v42  ;;  %v1142_v48 = vsel %vm1124_vm10, %v1072_v31, %v1141_v40  ;;  %v1798_v63 = vrot.slane %v1797_v49, 4  ;;  %v1804_v51 = vsel %vm925_vm0, %v1761_v34, -inf }
 0x222   : > { %v1143_v60 = vsel %vm1126_vm11, %v1079_v44, %v1142_v48  ;;  %v1811_v52 = vsel %vm925_vm0, %v1762_v45, -inf  ;;  %v1805_v54 = vrot.slane %v1804_v51, 4  ;;  %v1818_v55 = vsel %vm925_vm0, %v1763_v53, -inf }
 0x223   : > { %v1144_v50 = vsel %vm1128_vm12, %v1086_v46, %v1143_v60  ;;  %v1812_v5 = vrot.slane %v1811_v52, 4  ;;  %v1799_v57 = vmax.f32 %v1797_v49, %v1798_v63  ;;  %v1819_v58 = vrot.slane %v1818_v55, 4 }
 0x224   : > { %v1145_v56 = vsel %vm1130_vm13, %v1093_v47, %v1144_v50  ;;  %v1731_v59 = vmul.f32 %v3633_v15, %v1725_v43  ;;  %v1806_v3 = vmax.f32 %v1804_v51, %v1805_v54  ;;  %v1714_v6 = vadd.f32 %v1702_v26, %v1601_v38  ;;  %v1605_v51 = vpop.f32.mrf.mxu2 }
 0x225   : > { %v1527_v61 = vpop.f32.mrf.mxu1  ;;  %1151 = vst [vmem:[%s3679_s9 + $0x10] sm:$0xff] %v1145_v56  ;;  %v1813_v4 = vmax.f32 %v1811_v52, %v1812_v5  ;;  %v1800_v7 = vrot.slane %v1799_v57, 2  ;;  %v1820_v8 = vmax.f32 %v1818_v55, %v1819_v58 }
 0x226   : > { %v1737_v11 = vadd.f32 %v3638_v18, %v1731_v59  ;;  %v1807_v12 = vrot.slane %v1806_v3, 2  ;;  %v1720_v14 = vadd.f32 %v3627_v10, %v1714_v6  ;;  %v1603_v17 = vadd.f32 %v1602_v9, %v1527_v61 }
 0x227   : > { %v1814_v13 = vrot.slane %v1813_v4, 2  ;;  %v1801_v62 = vmax.f32 %v1799_v57, %v1800_v7  ;;  %v1821_v19 = vrot.slane %v1820_v8, 2 }
 0x228   : > { %v1743_v20 = vmax.f32 %v1737_v11, 0.0  ;;  %v1808_v21 = vmax.f32 %v1806_v3, %v1807_v12  ;;  %v1726_v0 = vmax.f32 %v1720_v14, 0.0 }
 0x229   : > { %v1704_v22 = vpop.f32.mrf.mxu3  ;;  %v1815_v23 = vmax.f32 %v1813_v4, %v1814_v13  ;;  %v1802_v25 = vrot.slane %v1801_v62, 1  ;;  %v1822_v27 = vmax.f32 %v1820_v8, %v1821_v19 }
 0x22a   : > { %v1715_v24 = vadd.f32 %v1704_v22, %v1603_v17  ;;  %2664 = vst [vmem:[%s3644_s30 + $0x38] sm:$0xff] %v1743_v20  ;;  %v1764_v28 = vrot.slane %v1743_v20, 2  ;;  %v1765_v1 = vrot.slane %v1743_v20, 4  ;;  %v1809_v29 = vrot.slane %v1808_v21, 1 }
 0x22b   : > { %v1816_v30 = vrot.slane %v1815_v23, 1  ;;  %v1766_v32 = vrot.slane %v1743_v20, 6  ;;  %v1825_v2 = vsel %vm925_vm0, %v1743_v20, -inf  ;;  %v1803_v33 = vmax.f32 %v1801_v62, %v1802_v25 }
 0x22c   : > { %v1823_v39 = vrot.slane %v1822_v27, 1  ;;  %v1826_v35 = vrot.slane %v1825_v2, 4  ;;  %v1832_v36 = vsel %vm925_vm0, %v1764_v28, -inf  ;;  %v1810_v40 = vmax.f32 %v1808_v21, %v1809_v29 }
 0x22d   : > { %v1817_v16 = vmax.f32 %v1815_v23, %v1816_v30  ;;  %v1833_v37 = vrot.slane %v1832_v36, 4  ;;  %v1839_v38 = vsel %vm925_vm0, %v1765_v1, -inf  ;;  %v1846_v42 = vsel %vm925_vm0, %v1766_v32, -inf  ;;  %v1530_v53 = vpop.f32.mrf.mxu1 }
 0x22e   : > { %v1827_v31 = vmax.f32 %v1825_v2, %v1826_v35  ;;  %v1840_v41 = vrot.slane %v1839_v38, 4  ;;  %v1989_v43 = vsel %vm1118_vm1, %v1810_v40, %v1803_v33  ;;  %v1847_v34 = vrot.slane %v1846_v42, 4 }
 0x22f   : > { %v1834_v44 = vmax.f32 %v1832_v36, %v1833_v37  ;;  %v1732_v45 = vmul.f32 %v3633_v15, %v1726_v0  ;;  %v1990_v26 = vsel %vm1120_vm8, %v1817_v16, %v1989_v43  ;;  %v1721_v48 = vadd.f32 %v3627_v10, %v1715_v24 }
 0x230   : > { %v1828_v46 = vrot.slane %v1827_v31, 2  ;;  %v1841_v47 = vmax.f32 %v1839_v38, %v1840_v41  ;;  %v1824_v49 = vmax.f32 %v1822_v27, %v1823_v39  ;;  %v1848_v63 = vmax.f32 %v1846_v42, %v1847_v34 }
 0x231   : > { %v1835_v60 = vrot.slane %v1834_v44, 2  ;;  %v1738_v52 = vadd.f32 %v3638_v18, %v1732_v45  ;;  %v1707_v50 = vpop.f32.mrf.mxu3  ;;  %v1727_v55 = vmax.f32 %v1721_v48, 0.0  ;;  %v1606_v56 = vadd.f32 %v1605_v51, %v1530_v53 }
 0x232   : > { %v1829_v54 = vmax.f32 %v1827_v31, %v1828_v46  ;;  %v1842_v5 = vrot.slane %v1841_v47, 2  ;;  %v1991_v57 = vsel %vm1122_vm9, %v1824_v49, %v1990_v26  ;;  %v1849_v59 = vrot.slane %v1848_v63, 2 }
 0x233   : > { %v1836_v58 = vmax.f32 %v1834_v44, %v1835_v60  ;;  %v1744_v61 = vmax.f32 %v1738_v52, 0.0  ;;  %v1733_v6 = vmul.f32 %v3633_v15, %v1727_v55  ;;  %v1716_v7 = vadd.f32 %v1707_v50, %v1606_v56  ;;  %v1607_v56 = vpop.f32.mrf.mxu2 }
 0x234   : > { %v1830_v3 = vrot.slane %v1829_v54, 1  ;;  %v1843_v4 = vmax.f32 %v1841_v47, %v1842_v5  ;;  %v1850_v9 = vmax.f32 %v1848_v63, %v1849_v59 }
 0x235   : > { %v1837_v8 = vrot.slane %v1836_v58, 1  ;;  %2665 = vst [vmem:[%s3644_s30 + $0x40] sm:$0xff] %v1744_v61  ;;  %v1767_v11 = vrot.slane %v1744_v61, 2  ;;  %v1768_v12 = vrot.slane %v1744_v61, 4  ;;  %v1769_v17 = vrot.slane %v1744_v61, 6  ;;  %v1532_v51 = vpop.f32.mrf.mxu1 }
 0x236   : > { %v1831_v13 = vmax.f32 %v1829_v54, %v1830_v3  ;;  %v1844_v14 = vrot.slane %v1843_v4, 1  ;;  %v1853_v62 = vsel %vm925_vm0, %v1744_v61, -inf  ;;  %v1851_v20 = vrot.slane %v1850_v9, 1 }
 0x237   : > { %v1838_v19 = vmax.f32 %v1836_v58, %v1837_v8  ;;  %v1854_v22 = vrot.slane %v1853_v62, 4  ;;  %v1860_v21 = vsel %vm925_vm0, %v1767_v11, -inf  ;;  %v1867_v25 = vsel %vm925_vm0, %v1768_v12, -inf }
 0x238   : > { %v1845_v23 = vmax.f32 %v1843_v4, %v1844_v14  ;;  %v1992_v0 = vsel %vm1124_vm10, %v1831_v13, %v1991_v57  ;;  %v1861_v24 = vrot.slane %v1860_v21, 4  ;;  %v1852_v27 = vmax.f32 %v1850_v9, %v1851_v20 }
 0x239   : > { %v1993_v28 = vsel %vm1126_vm11, %v1838_v19, %v1992_v0  ;;  %v1855_v1 = vmax.f32 %v1853_v62, %v1854_v22  ;;  %v1868_v29 = vrot.slane %v1867_v25, 4  ;;  %v1874_v2 = vsel %vm925_vm0, %v1769_v17, -inf }
 0x23a   : > { %v1994_v30 = vsel %vm1128_vm12, %v1845_v23, %v1993_v28  ;;  %v1862_v32 = vmax.f32 %v1860_v21, %v1861_v24  ;;  %v1739_v33 = vadd.f32 %v3638_v18, %v1733_v6  ;;  %v1875_v40 = vrot.slane %v1874_v2, 4 }
 0x23b   : > { %v1995_v39 = vsel %vm1130_vm13, %v1852_v27, %v1994_v30  ;;  %v1856_v35 = vrot.slane %v1855_v1, 2  ;;  %v1869_v36 = vmax.f32 %v1867_v25, %v1868_v29  ;;  %v1722_v42 = vadd.f32 %v3627_v10, %v1716_v7  ;;  %v1709_v7 = vpop.f32.mrf.mxu3 }
 0x23c   : > { %2669 = vst [vmem:[%s3679_s9 + $0x18] sm:$0xff] %v1995_v39  ;;  %v1863_v16 = vrot.slane %v1862_v32, 2  ;;  %v1745_v37 = vmax.f32 %v1739_v33, 0.0  ;;  %v1876_v41 = vmax.f32 %v1874_v2, %v1875_v40  ;;  %v1608_v6 = vadd.f32 %v1607_v56, %v1532_v51 }
 0x23d   : > { %v1857_v38 = vmax.f32 %v1855_v1, %v1856_v35  ;;  %v1870_v31 = vrot.slane %v1869_v36, 2  ;;  %v1728_v12 = vmax.f32 %v1722_v42, 0.0 }
 0x23e   : > { %v1864_v43 = vmax.f32 %v1862_v32, %v1863_v16  ;;  %2666 = vst [vmem:[%s3644_s30 + $0x48] sm:$0xff] %v1745_v37  ;;  %v1770_v44 = vrot.slane %v1745_v37, 2  ;;  %v1771_v34 = vrot.slane %v1745_v37, 4  ;;  %v1772_v45 = vrot.slane %v1745_v37, 6 }
 0x23f   : > { %v1858_v53 = vrot.slane %v1857_v38, 1  ;;  %v1871_v26 = vmax.f32 %v1869_v36, %v1870_v31  ;;  %v1877_v46 = vrot.slane %v1876_v41, 2  ;;  %v1881_v47 = vsel %vm925_vm0, %v1745_v37, -inf }
 0x240   : > { %v1865_v48 = vrot.slane %v1864_v43, 1  ;;  %v1882_v49 = vrot.slane %v1881_v47, 4  ;;  %v1888_v60 = vsel %vm925_vm0, %v1770_v44, -inf  ;;  %v1895_v63 = vsel %vm925_vm0, %v1771_v34, -inf }
 0x241   : > { %v1859_v52 = vmax.f32 %v1857_v38, %v1858_v53  ;;  %v1872_v50 = vrot.slane %v1871_v26, 1  ;;  %v1878_v54 = vmax.f32 %v1876_v41, %v1877_v46  ;;  %v1889_v5 = vrot.slane %v1888_v60, 4 }
 0x242   : > { %v1866_v55 = vmax.f32 %v1864_v43, %v1865_v48  ;;  %v1883_v57 = vmax.f32 %v1881_v47, %v1882_v49  ;;  %v1896_v58 = vrot.slane %v1895_v63, 4  ;;  %v1902_v59 = vsel %vm925_vm0, %v1772_v45, -inf }
 0x243   : > { %v1873_v61 = vmax.f32 %v1871_v26, %v1872_v50  ;;  %v1890_v3 = vmax.f32 %v1888_v60, %v1889_v5  ;;  %v1903_v4 = vrot.slane %v1902_v59, 4  ;;  %v1879_v13 = vrot.slane %v1878_v54, 1 }
 0x244   : > { %v1996_v8 = vsel %vm1118_vm1, %v1866_v55, %v1859_v52  ;;  %v1884_v9 = vrot.slane %v1883_v57, 2  ;;  %v1897_v11 = vmax.f32 %v1895_v63, %v1896_v58  ;;  %v1734_v20 = vmul.f32 %v3633_v15, %v1728_v12 }
 0x245   : > { %v1891_v14 = vrot.slane %v1890_v3, 2  ;;  %v1904_v17 = vmax.f32 %v1902_v59, %v1903_v4  ;;  %v1717_v22 = vadd.f32 %v1709_v7, %v1608_v6  ;;  %v1997_v21 = vsel %vm1120_vm8, %v1873_v61, %v1996_v8 }
 0x246   : > { %v1885_v62 = vmax.f32 %v1883_v57, %v1884_v9  ;;  %v1898_v19 = vrot.slane %v1897_v11, 2  ;;  %v1740_v27 = vadd.f32 %v3638_v18, %v1734_v20  ;;  %v1880_v1 = vmax.f32 %v1878_v54, %v1879_v13 }
 0x247   : > { %v1892_v23 = vmax.f32 %v1890_v3, %v1891_v14  ;;  %v1905_v0 = vrot.slane %v1904_v17, 2  ;;  %v1723_v28 = vadd.f32 %v3627_v10, %v1717_v22 }
 0x248   : > { %v1886_v24 = vrot.slane %v1885_v62, 1  ;;  %v1899_v25 = vmax.f32 %v1897_v11, %v1898_v19  ;;  %v1746_v33 = vmax.f32 %v1740_v27, 0.0  ;;  %v1998_v39 = vsel %vm1122_vm9, %v1880_v1, %v1997_v21 }
 0x249   : > { %v1893_v29 = vrot.slane %v1892_v23, 1  ;;  %v1906_v30 = vmax.f32 %v1904_v17, %v1905_v0  ;;  %v1729_v40 = vmax.f32 %v1723_v28, 0.0 }
 0x24a   : > { %v1887_v32 = vmax.f32 %v1885_v62, %v1886_v24  ;;  %v1900_v2 = vrot.slane %v1899_v25, 1  ;;  %2667 = vst [vmem:[%s3644_s30 + $0x50] sm:$0xff] %v1746_v33  ;;  %v1773_v38 = vrot.slane %v1746_v33, 2  ;;  %v1774_v31 = vrot.slane %v1746_v33, 4 }
 0x24b   : > { %v1894_v35 = vmax.f32 %v1892_v23, %v1893_v29  ;;  %v1907_v36 = vrot.slane %v1906_v30, 1  ;;  %v1775_v42 = vrot.slane %v1746_v33, 6  ;;  %v1909_v43 = vsel %vm925_vm0, %v1746_v33, -inf }
 0x24c   : > { %v1901_v16 = vmax.f32 %v1899_v25, %v1900_v2  ;;  %v1999_v37 = vsel %vm1124_vm10, %v1887_v32, %v1998_v39  ;;  %v1910_v34 = vrot.slane %v1909_v43, 4  ;;  %v1916_v45 = vsel %vm925_vm0, %v1773_v38, -inf }
 0x24d   : > { %v1908_v41 = vmax.f32 %v1906_v30, %v1907_v36  ;;  %v2000_v10 = vsel %vm1126_vm11, %v1894_v35, %v1999_v37  ;;  %v1923_v53 = vsel %vm925_vm0, %v1774_v31, -inf  ;;  %v1917_v46 = vrot.slane %v1916_v45, 4 }
 0x24e   : > { %v2001_v44 = vsel %vm1128_vm12, %v1901_v16, %v2000_v10  ;;  %v1924_v47 = vrot.slane %v1923_v53, 4  ;;  %v1930_v48 = vsel %vm925_vm0, %v1775_v42, -inf  ;;  %v1911_v49 = vmax.f32 %v1909_v43, %v1910_v34 }
 0x24f   : > { %v2002_v26 = vsel %vm1130_vm13, %v1908_v41, %v2001_v44  ;;  %v1931_v60 = vrot.slane %v1930_v48, 4  ;;  %v1735_v63 = vmul.f32 %v3633_v15, %v1729_v40  ;;  %v1918_v51 = vmax.f32 %v1916_v45, %v1917_v46 }
 0x250   : > { %2670 = vst [vmem:[%s3679_s9 + $0x20] sm:$0xff] %v2002_v26  ;;  %v1925_v52 = vmax.f32 %v1923_v53, %v1924_v47  ;;  %v1912_v50 = vrot.slane %v1911_v49, 2 }
 0x251   : > { %v1932_v54 = vmax.f32 %v1930_v48, %v1931_v60  ;;  %v1741_v5 = vadd.f32 %v3638_v18, %v1735_v63  ;;  %v1919_v55 = vrot.slane %v1918_v51, 2 }
 0x252   : > { %v1926_v56 = vrot.slane %v1925_v52, 2  ;;  %v1913_v57 = vmax.f32 %v1911_v49, %v1912_v50 }
 0x253   : > { %v1747_v58 = vmax.f32 %v1741_v5, 0.0  ;;  %v1920_v59 = vmax.f32 %v1918_v51, %v1919_v55  ;;  %v1933_v3 = vrot.slane %v1932_v54, 2 }
 0x254   : > { %v1927_v61 = vmax.f32 %v1925_v52, %v1926_v56  ;;  %v1914_v7 = vrot.slane %v1913_v57, 1 }
 0x255   : > { %2668 = vst [vmem:[%s3644_s30 + $0x58] sm:$0xff] %v1747_v58  ;;  %v1776_v4 = vrot.slane %v1747_v58, 2  ;;  %v1777_v6 = vrot.slane %v1747_v58, 4  ;;  %v1921_v8 = vrot.slane %v1920_v59, 1  ;;  %v1778_v9 = vrot.slane %v1747_v58, 6 }
 0x256   : > { %v1937_v15 = vsel %vm925_vm0, %v1747_v58, -inf  ;;  %v1928_v11 = vrot.slane %v1927_v61, 1  ;;  %v1934_v14 = vmax.f32 %v1932_v54, %v1933_v3  ;;  %v1915_v21 = vmax.f32 %v1913_v57, %v1914_v7 }
 0x257   : > { %v1938_v12 = vrot.slane %v1937_v15, 4  ;;  %v1944_v13 = vsel %vm925_vm0, %v1776_v4, -inf  ;;  %v1922_v18 = vmax.f32 %v1920_v59, %v1921_v8  ;;  %v1951_v62 = vsel %vm925_vm0, %v1777_v6, -inf }
 0x258   : > { %v1945_v17 = vrot.slane %v1944_v13, 4  ;;  %v1952_v20 = vrot.slane %v1951_v62, 4  ;;  %v1958_v22 = vsel %vm925_vm0, %v1778_v9, -inf  ;;  %v1929_v24 = vmax.f32 %v1927_v61, %v1928_v11 }
 0x259   : > { %v1939_v19 = vmax.f32 %v1937_v15, %v1938_v12  ;;  %v1959_v0 = vrot.slane %v1958_v22, 4  ;;  %v1935_v28 = vrot.slane %v1934_v14, 1  ;;  %v2003_v1 = vsel %vm1118_vm1, %v1922_v18, %v1915_v21 }
 0x25a   : > { %v1946_v23 = vmax.f32 %v1944_v13, %v1945_v17  ;;  %v1953_v27 = vmax.f32 %v1951_v62, %v1952_v20  ;;  %v2004_v35 = vsel %vm1120_vm8, %v1929_v24, %v2003_v1 }
 0x25b   : > { %v1940_v25 = vrot.slane %v1939_v19, 2  ;;  %v1960_v30 = vmax.f32 %v1958_v22, %v1959_v0  ;;  %v1936_v16 = vmax.f32 %v1934_v14, %v1935_v28 }
 0x25c   : > { %v1947_v29 = vrot.slane %v1946_v23, 2  ;;  %v1954_v2 = vrot.slane %v1953_v27, 2 }
 0x25d   : > { %v1941_v32 = vmax.f32 %v1939_v19, %v1940_v25  ;;  %v1961_v39 = vrot.slane %v1960_v30, 2  ;;  %v2005_v10 = vsel %vm1122_vm9, %v1936_v16, %v2004_v35 }
 0x25e   : > { %v1948_v33 = vmax.f32 %v1946_v23, %v1947_v29  ;;  %v1955_v40 = vmax.f32 %v1953_v27, %v1954_v2 }
 0x25f   : > { %v1942_v36 = vrot.slane %v1941_v32, 1  ;;  %v1962_v38 = vmax.f32 %v1960_v30, %v1961_v39 }
 0x260   : > { %v1949_v37 = vrot.slane %v1948_v33, 1  ;;  %v1956_v41 = vrot.slane %v1955_v40, 1 }
 0x261   : > { %v1943_v31 = vmax.f32 %v1941_v32, %v1942_v36  ;;  %v1963_v43 = vrot.slane %v1962_v38, 1 }
 0x262   : > { %v1950_v42 = vmax.f32 %v1948_v33, %v1949_v37  ;;  %v1957_v44 = vmax.f32 %v1955_v40, %v1956_v41 }
 0x263   : > { %v2006_v34 = vsel %vm1124_vm10, %v1943_v31, %v2005_v10  ;;  %v1964_v45 = vmax.f32 %v1962_v38, %v1963_v43  ;;  %2028 = sbr.rel (!%p3214_p3) target bundleno = 648 (0x288), region = 40 }
 0x264   : > { %v2007_v53 = vsel %vm1126_vm11, %v1950_v42, %v2006_v34 }
 0x265   : > { %v2008_v26 = vsel %vm1128_vm12, %v1957_v44, %v2007_v53 }
 0x266   : > { %v2009_v46 = vsel %vm1130_vm13, %v1964_v45, %v2008_v26 }
 0x267   : > { %2671 = vst [vmem:[%s3679_s9 + $0x28] sm:$0xff] %v2009_v46 }
 0x268   : > { %s3962_s15 = smov (!%p2031_p13, %s2030_s15), 12 }
 0x269   : > { %s2672_s16 = sshll.u32 %s3962_s15, 3 }
 0x26a   : > { %s2034_s12 = ssub.s32 96, %s2672_s16 }
 0x26b   : > { %s2035_s17 = sshll.u32 %s2034_s12, 4 }
 0x26c   : > { %2036 = vsyncadd %s3920_s10, %s2035_s17  ;;  %p3800_p0 = scmp.ne.s32.totalorder %s2672_s16, 0  ;;  %s2800_s27 = smul.u32 25, %s3082_s22 }
 0x26d   : > { %s2043_s8 = sshll.u32 %s3644_s30, 4  ;;  %s2676_s0 = sshll.u32 %s3962_s15, 7  ;;  %s3807_s8 = int_to_ptr.vmem [resolvable:$true] %s2043_s8 }
 0x26e   : > { %s2039_s1 = sadd.s32 %s2800_s27, %s2029_s14  ;;  %s2957_s16 = sshra.s32 %s3807_s8, 4  ;;  %s2958_s16 = int_to_ptr.vmem [resolvable:$true] %s2957_s16 }
 0x26f   : > { %s2674_s2 = sshll.u32 %s2039_s1, 3  ;;  %s2959_s29 = sshrl.u32 %s2676_s0, 4 }
 0x270   : > { %s2041_s17 = scalar_lea.hbm %s3918_s4, %s2674_s2  ;;  %s2964_s28 = scalar_lea.vmem %s2958_s16, %s2959_s29 }
 0x271   : > { %s2045_s10 = sshll.u32 %s2041_s17, 4  ;;  %p2965_p1 = scmp.ne.s32.totalorder %s2958_s16, %s2964_s28  ;;  %s3812_s10 = int_to_ptr.hbm [resolvable:$true] %s2045_s10 }
 0x272   : > { %s3130_s30 = smov [#allocation3]  }
 0x273   : > { %p2966_p2 = pnand %p2965_p1, %p3800_p0  ;;  %s2968_s14 = scalar_lea.vmem %s3130_s30, 192 }
 0x274   : > { %p2970_p5 = scmp.lt.s32.totalorder %s2968_s14, %s2964_s28 }
 0x275   : > { %p2967_p4 = pneg %p2966_p2 }
 0x277   : > { %p2972_p6 = pnand %p2970_p5, %p2967_p4 }
 0x279   : > { %2975 = shalt.err (!%p2972_p6)
}
 0x27a   : > { %s2976_s1 = sshra.s32 %s3812_s10, 4  ;;  %s2987_s12 = scalar_lea.hbm %s3918_s4, 400  ;;  %s2977_s1 = int_to_ptr.hbm [resolvable:$true] %s2976_s1 }
 0x27b   : > { %s2983_s2 = scalar_lea.hbm %s2977_s1, %s2959_s29  ;;  %p2988_p11 = scmp.lt.s32.totalorder %s2977_s1, %s3918_s4 }
 0x27c   : > { %p2984_p7 = scmp.ne.s32.totalorder %s2977_s1, %s2983_s2  ;;  %p2989_p12 = scmp.lt.s32.totalorder %s2987_s12, %s2983_s2 }
 0x27e   : > { %p2985_p9 = pnand %p2984_p7, %p3800_p0  ;;  %p2990_p13 = por %p2989_p12, %p2988_p11 }
 0x280   : > { %p2986_p10 = pneg %p2985_p9 }
 0x282   : > { %p2991_p1 = pnand %p2990_p13, %p2986_p10 }
 0x284   : > { %2994 = shalt.err (!%p2991_p1)
}
 0x285   : > { %s3131_s28 = smov 128   ;;  %s3132_s29 = smov 8  }
 0x286   : > { %s3942_s30 = scalar_lea.sflag [#allocation4], %s3592_s13 }
 0x287   : > { %2051 = dma.vmem_to_hbm [thread:$0]  (%p3800_p0), %s3807_s8, %s2676_s0, %s3812_s10, %s3942_s30, %s3131_s28, %s3131_s28, %s3132_s29  }
 0x288 PF: > { %2054 = sbr.rel (!%p3214_p3) target bundleno = 708 (0x2c4), region = 44 }
 0x289   : > { %s2055_s14 = smul.u32 (%p3214_p3), 6, %s3078_s21 }
 0x28a   : > { %s2801_s1 = smul.u32 (%p3214_p3), 13, %s3082_s22 }
 0x28b   : > { %s2056_s2 = ssub.s32 (%p3214_p3), 13, %s2055_s14 }
 0x28c   : > { %p2057_p2 = scmp.lt.s32.totalorder (%p3214_p3), %s2056_s2, 6  ;;  %s2062_s3 = sadd.s32 (%p3214_p3), %s2801_s1, %s2055_s14 }
 0x28d   : > { %s2679_s27 = sshll.u32 %s2062_s3, 3 }
 0x28e   : > { %s3964_s2 = smov (!%p2057_p2, %s2056_s2), 6  ;;  %s3845_s13 = scalar_lea.vmem %s3919_s5, %s2679_s27  }
 0x28f   : > { %s2677_s0 = sshll.u32 %s3964_s2, 3 }
 0x290   : > { %p2680_p0 = scmp.eq.s32.totalorder %s2677_s0, 0 }
 0x291   : > { %2945 = sdivrem.u32 (!%p2680_p0), %s3964_s2, 6 }
 0x292   : > { %2067 = sbr.rel (%p2680_p0) target bundleno = 708 (0x2c4), region = 48 }
 0x29a   : > { %s3849_s6 = spop.drf %2945 }
 0x29b   : > { %s2947_s21 = spop.drf %2945  ;;  %p2681_p3 = scmp.le.s32.totalorder %s3849_s6, 0 }
 0x29c   : > { %s3943_s22 = smov (!%p2681_p3), %s3845_s13  ;;  %s3944_s10 = smov (!%p2681_p3), %s3679_s9 }
 0x29d   : > { %2278 = sbr.rel (%p2681_p3) target bundleno = 682 (0x2aa), region = 143  ;;  %s3858_s15 = smov (!%p2681_p3), 0  }
 0x29e   : > { %s3860_s26 = smov (!%p2681_p3), 0  }
 0x2a2 LB: >> { %v2142_v47 = vld [vmem:[%s3102_s10] sm:$0xff]  ;;  %v2144_v48 = vld [vmem:[%s3102_s10 + $0x8] sm:$0xff]  ;;  %v2146_v49 = vld [vmem:[%s3102_s10 + $0x10] sm:$0xff]  ;;  %s2154_s8 = sadd.s32 1, %s3106_s15  ;;  %s2136_s26 = sadd.s32 1, %s3110_s26   ;;  %s3110_s26 = sphi %s3860_s26, %s2136_s26   ;;  %s3106_s15 = sphi %s3858_s15, %s3945_s15   ;;  %s3102_s10 = sphi %s3944_s10, %s2159_s10   ;;  %s3098_s22 = sphi %s3943_s22, %s2160_s22  }
 0x2a3   : >> { %2143 = vst [vmem:[%s3098_s22] sm:$0xff] %v2142_v47  ;;  %v2148_v60 = vld [vmem:[%s3102_s10 + $0x18] sm:$0xff]  ;;  %p2155_p4 = scmp.ge.s32.totalorder %s2154_s8, %s3849_s6  ;;  %v2150_v63 = vld [vmem:[%s3102_s10 + $0x20] sm:$0xff]  ;;  %v2152_v51 = vld [vmem:[%s3102_s10 + $0x28] sm:$0xff]  ;;  %p2135_p5 = scmp.ge.s32.totalorder %s2136_s26, %s3849_s6 }
 0x2a4   : >> { %2145 = vst [vmem:[%s3098_s22 + $0x8] sm:$0xff] %v2144_v48 }
 0x2a5   : >> { %2147 = vst [vmem:[%s3098_s22 + $0x10] sm:$0xff] %v2146_v49  ;;  %s3966_s8 = smov (%p2155_p4, %s2154_s8), 0  ;;  %2138 = sbr.rel (!%p2135_p5) target bundleno = 674 (0x2a2), region = 149 }
 0x2a6   : >> { %2149 = vst [vmem:[%s3098_s22 + $0x18] sm:$0xff] %v2148_v60  ;;  %s2157_s16 = smul.u32 48, %s3966_s8  ;;  %s3945_s15 = smov %s3966_s8 }
 0x2a7   : >> { %2151 = vst [vmem:[%s3098_s22 + $0x20] sm:$0xff] %v2150_v63 }
 0x2a8   : >> { %2153 = vst [vmem:[%s3098_s22 + $0x28] sm:$0xff] %v2152_v51  ;;  %s2159_s10 = scalar_lea.vmem %s3679_s9, %s2157_s16 [#allocation5]   ;;  %s2160_s22 = scalar_lea.vmem %s3845_s13, %s2157_s16  }
 0x2aa PF: > { %2948 = sdivrem.u32 %s3964_s2, 6 }
 0x2ab   : > { %s2682_s28 = smul.u32 48, %s3849_s6 }
 0x2ad   : > { %s3881_s29 = scalar_lea.vmem %s3679_s9, %s2682_s28 [#allocation5]   ;;  %s2167_s30 = scalar_lea.vmem %s3845_s13, %s2682_s28  }
 0x2b3   : > { %s2949_s14 = spop.drf %2948 }
 0x2b4   : > { %s2950_s1 = spop.drf %2948 }
 0x2b5   : > { %p2684_p6 = scmp.le.s32.totalorder %s2950_s1, 0 }
 0x2b6   : > { %s3112_s3 = smov (!%p2684_p6), %s2167_s30   ;;  %s3116_s27 = smov (!%p2684_p6), %s3881_s29  }
 0x2b7   : > { %2292 = sbr.rel (%p2684_p6) target bundleno = 708 (0x2c4), region = 154  ;;  %s3120_s12 = smov (!%p2684_p6), 0  }
 0x2b8   : > { %s3124_s17 = smov (!%p2684_p6), 0  }
 0x2bc LB: >> { %v2177_v52 = vld [vmem:[%s3118_s27] sm:$0xff]  ;;  %s2179_s9 = sadd.s32 1, %s3122_s12  ;;  %s2171_s17 = sadd.s32 1, %s3126_s17   ;;  %s3126_s17 = sphi %s3124_s17, %s2171_s17   ;;  %s3122_s12 = sphi %s3120_s12, %s3121_s12   ;;  %s3118_s27 = sphi %s3116_s27, %s2184_s27   ;;  %s3114_s3 = sphi %s3112_s3, %s2185_s3  }
 0x2bd   : >> { %2178 = vst [vmem:[%s3114_s3] sm:$0xff] %v2177_v52  ;;  %p2180_p7 = scmp.ge.s32.totalorder %s2179_s9, %s2950_s1  ;;  %p2170_p9 = scmp.ge.s32.totalorder %s2171_s17, %s2950_s1 }
 0x2bf   : >> { %s3968_s9 = smov (%p2180_p7, %s2179_s9), 0  ;;  %2173 = sbr.rel (!%p2170_p9) target bundleno = 700 (0x2bc), region = 160 }
 0x2c0   : >> { %s2685_s2 = sshll.u32 %s3968_s9, 3  ;;  %s3121_s12 = smov %s3968_s9  }
 0x2c1   : >> { %s2184_s27 = scalar_lea.vmem %s3881_s29, %s2685_s2 [#allocation5]   ;;  %s2185_s3 = scalar_lea.vmem %s2167_s30, %s2685_s2  }
 0x2c4 PF: > { %p2807_p10 = scmp.ge.s32.totalorder %s3094_s25, 2  ;;  %s2197_s13 = sand.u32 1, %s3066_s18  }
 0x2c5   : > { %s2198_s0 = scalar_lea.sflag [#allocation4], %s2197_s13 }
 0x2c6   : > { %p2804_p11 = pnand %p2807_p10, %p3223_p8 }
 0x2c8   : > { %p2805_p12 = pneg %p2804_p11 }
 0x2ca   : > { %3061 = dma.done.wait (%p2805_p12), %s2198_s0, 1536  }
 0x2cb   : > { %3063 = vsyncadd (%p2805_p12), %s2198_s0, 4294965760  ;;  %s19_s25 = sadd.s32 1, %s3094_s25   ;;  %s3946_s6 = sld [smem:[#allocation7_spill]] }
 0x2cc   : > { %p16_p13 = scmp.ge.s32.totalorder %s19_s25, 8   ;;  %s3947_s10 = sld [smem:[#allocation8_spill]] }
 0x2cd   : > { %s3948_s18 = smov %s3070_s19  ;;  %s3949_s19 = smov %s3074_s20 }
 0x2ce   : > { %s3950_s20 = smov %s3232_s11  ;;  %s3951_s21 = smov %s3086_s23 }
 0x2cf   : > { %s3952_s22 = smov %s3090_s24  ;;  %18 = sbr.rel (!%p16_p13) target bundleno = 10 (0xa), region = 171 }
 0x2d1   : > { %s3953_s23 = smov %s3946_s6 }
 0x2d2   : > { %s3954_s24 = smov %s3947_s10 }
 0x2d4   :  { %2211 = vsyncpa [#allocation4], 1 }
 0x2d5   :  { %2213 = vsyncpa [#allocation4 + $0x1], 1 }

</bundles_post_ra>
